<compile_context>
chip_gen: v5e
topology: v5e:2x2
jax: 0.10.0
libtpu: 0.0.40
codegen_flags: <defaults>
</compile_context>

<pallas_src>
import functools

import jax
import jax.numpy as jnp
from jax import lax
from jax.experimental import pallas as pl
from jax.experimental.pallas import tpu as pltpu

KD, KH, KW = 3, 9, 3
K = KD * KH * KW            # 81 window offsets
EPS = 0.01                  # BatchNorm3d eps from the module
LANES = 128


def _round_up(a, b):
    return (a + b - 1) // b * b


def _pick_p_tile(p, kc):
    """Row-tile size for the conv/BN passes.

    Review guidance: ~1024-2048 rows on v7x, 2048-4096 on v6e, smaller on v5e.
    Cap the bf16 patch tile at ~4 MiB (it is double-buffered by the pipeline)
    and fall back to 256 rows for tiny test shapes so the grid still has
    several steps.
    """
    cap = max(256, (4 * 1024 * 1024) // (2 * kc))
    for t in (4096, 2048, 1024, 512, 256):
        if t <= cap and p >= 4 * t:
            return t
    return 256


# ---------------------------------------------------------------------------
# Pass 1: conv as an im2col matmul (bf16 -> f32 accumulate) + ReLU, plus
# per-channel sum / sum-of-squares accumulated across the whole grid into
# resident (1, C_PAD) outputs (index_map always (0, 0), init at step 0).
# ---------------------------------------------------------------------------
def _conv_stats_kernel(cp_ref, w_ref, y_ref, s_ref, q_ref):
    i = pl.program_id(0)

    @pl.when(i == 0)
    def _init():
        s_ref[...] = jnp.zeros_like(s_ref)
        q_ref[...] = jnp.zeros_like(q_ref)

    y = jnp.dot(cp_ref[...], w_ref[...], preferred_element_type=jnp.float32)
    y = jnp.maximum(y, 0.0)                                   # ReLU
    y_ref[...] = y                                            # lane-dense (TILE_P, 128) store
    s_ref[...] += jnp.sum(y, axis=0, keepdims=True)           # per-channel sum
    q_ref[...] += jnp.sum(y * y, axis=0, keepdims=True)       # per-channel sum of squares


# ---------------------------------------------------------------------------
# Pass 2: apply BatchNorm with precomputed per-channel scale / shift.
# ---------------------------------------------------------------------------
def _bn_apply_kernel(y_ref, scale_ref, shift_ref, o_ref):
    o_ref[...] = y_ref[...] * scale_ref[...] + shift_ref[...]


# ---------------------------------------------------------------------------
# Pool: H-direction max (window 9) on rows whose lane axis is the flattened
# (H+2, W) plane.  The D(3) and W(3) maxima were already taken in the wrapper,
# so this is 8 shifted maxima per element; the shifted windows are static lane
# slices of the same VMEM tile (input read exactly once).
# ---------------------------------------------------------------------------
def _pool_h_kernel(x_ref, o_ref, *, w_len, hw_out):
    m = x_ref[:, 0:hw_out]
    for kh in range(1, KH):
        off = kh * w_len
        m = jnp.maximum(m, x_ref[:, off:off + hw_out])
    o_ref[...] = m


def _im2col(xp, dout, hout, wout):
    # xp: (N, D+2, H+2, W+2, Cin), zero padded, bf16.  Offset order (kd, kh, kw)
    # to match the weight reshape in the wrapper.
    slabs = []
    for kd in range(KD):
        for kh in range(KH):
            for kw in range(KW):
                slabs.append(xp[:, kd:kd + dout, kh:kh + hout, kw:kw + wout, :])
    stack = jnp.stack(slabs, axis=4)                      # (N, Do, Ho, Wo, K, Cin)
    return stack.reshape(-1, K * xp.shape[-1])            # (P, K*Cin)


@jax.jit
def s2_forward(x, w, gamma, beta):
    """x: (N, Cin, D, H, W), w: (Cout, Cin, 3, 9, 3) -> (N, Cin+Cout, D, H-6, W)."""
    n, cin, d, h, wdt = x.shape
    cout = w.shape[0]
    dout, hout, wout = d, h - 6, wdt
    p = n * dout * hout * wout
    kc = K * cin                                   # contraction length (full block, no grid axis)
    c_pad = _round_up(max(cout, LANES), LANES)     # lane-dense padded channel axis

    tile_p = _pick_p_tile(p, kc)
    p_pad = _round_up(p, tile_p)
    num_tiles = p_pad // tile_p

    # ------------------- branch 2 prep (conv patches + weights) -------------------
    xt = jnp.transpose(x, (0, 2, 3, 4, 1)).astype(jnp.bfloat16)        # NDHWC, bf16
    xp = jnp.pad(xt, ((0, 0), (1, 1), (1, 1), (1, 1), (0, 0)))         # zero pad (conv)
    cpatch = _im2col(xp, dout, hout, wout)                              # (P, K*Cin) bf16
    if p_pad != p:
        # Zero rows: relu(0 @ w) = 0, so they contribute nothing to the BN sums.
        cpatch = jnp.pad(cpatch, ((0, p_pad - p), (0, 0)))

    # PyTorch weight (Cout, Cin, KD, KH, KW) -> (KD, KH, KW, Cin, Cout) -> (K*Cin, Cout),
    # zero-padded to c_pad output lanes so every kernel store is an unmasked vst.
    w2d = jnp.transpose(w, (2, 3, 4, 1, 0)).reshape(kc, cout)
    w2d = jnp.pad(w2d, ((0, 0), (0, c_pad - cout))).astype(jnp.bfloat16)

    # ------------------- pass 1: conv + ReLU + BN statistics -------------------
    y_pad, ch_sum, ch_sq = pl.pallas_call(
        _conv_stats_kernel,
        grid=(num_tiles,),
        in_specs=[
            pl.BlockSpec((tile_p, kc), lambda i: (i, 0)),      # patch row tile
            pl.BlockSpec((kc, c_pad), lambda i: (0, 0)),       # weights, resident
        ],
        out_specs=(
            pl.BlockSpec((tile_p, c_pad), lambda i: (i, 0)),   # y = relu(conv), lane dense
            pl.BlockSpec((1, c_pad), lambda i: (0, 0)),        # resident sum accumulator
            pl.BlockSpec((1, c_pad), lambda i: (0, 0)),        # resident sumsq accumulator
        ),
        out_shape=(
            jax.ShapeDtypeStruct((p_pad, c_pad), jnp.float32),
            jax.ShapeDtypeStruct((1, c_pad), jnp.float32),
            jax.ShapeDtypeStruct((1, c_pad), jnp.float32),
        ),
        # The stats outputs accumulate across this grid axis, so it must stay
        # "arbitrary" (megacore split would need per-core partial sums).
        compiler_params=pltpu.CompilerParams(dimension_semantics=("arbitrary",)),
    )(cpatch, w2d)

    # BN statistics finalized once on a tiny (1, 128) vector (multiply by the
    # precomputed 1/P instead of dividing; biased batch variance).
    inv_p = 1.0 / p
    mean = ch_sum * inv_p
    var = jnp.maximum(ch_sq * inv_p - mean * mean, 0.0)
    inv = lax.rsqrt(var + EPS)
    g2d = jnp.pad(gamma.astype(jnp.float32).reshape(1, cout), ((0, 0), (0, c_pad - cout)))
    b2d = jnp.pad(beta.astype(jnp.float32).reshape(1, cout), ((0, 0), (0, c_pad - cout)))
    scale = g2d * inv
    shift = b2d - mean * scale

    # ------------------- pass 2: normalize -------------------
    bn_pad = pl.pallas_call(
        _bn_apply_kernel,
        grid=(num_tiles,),
        in_specs=[
            pl.BlockSpec((tile_p, c_pad), lambda i: (i, 0)),
            pl.BlockSpec((1, c_pad), lambda i: (0, 0)),
            pl.BlockSpec((1, c_pad), lambda i: (0, 0)),
        ],
        out_specs=pl.BlockSpec((tile_p, c_pad), lambda i: (i, 0)),
        out_shape=jax.ShapeDtypeStruct((p_pad, c_pad), jnp.float32),
        compiler_params=pltpu.CompilerParams(dimension_semantics=("parallel",)),
    )(y_pad, scale, shift)

    # ------------------- branch 1: separable MaxPool3d(3, 9, 3) -------------------
    # Cheap D(3) and W(3) maxima as reduce_window in the wrapper (reads x ~twice),
    # expensive H(9) maximum in the Pallas kernel on lane-flattened (H+2)*W rows.
    xf = x.astype(jnp.float32)
    a = lax.reduce_window(xf, -jnp.inf, lax.max,
                          window_dimensions=(1, 1, KD, 1, 1),
                          window_strides=(1, 1, 1, 1, 1),
                          padding=((0, 0), (0, 0), (1, 1), (0, 0), (0, 0)))
    b = lax.reduce_window(a, -jnp.inf, lax.max,
                          window_dimensions=(1, 1, 1, 1, KW),
                          window_strides=(1, 1, 1, 1, 1),
                          padding=((0, 0), (0, 0), (0, 0), (0, 0), (1, 1)))
    c = jnp.pad(b, ((0, 0), (0, 0), (0, 0), (1, 1), (0, 0)),
                constant_values=-jnp.inf)                       # (N, Cin, D, H+2, W)
    hp2 = h + 2
    r = n * cin * dout
    rows = c.reshape(r, hp2 * wout)

    # Row tile: multiple of 8, ~2 MiB of input per tile, capped at 512 rows.
    tile_r = max(8, min(512, (2 * 1024 * 1024) // (hp2 * wout * 4)))
    tile_r = min(_round_up(tile_r, 8), _round_up(r, 8))
    r_pad = _round_up(r, tile_r)
    if r_pad != r:
        rows = jnp.pad(rows, ((0, r_pad - r), (0, 0)))

    pool_rows = pl.pallas_call(
        functools.partial(_pool_h_kernel, w_len=wout, hw_out=hout * wout),
        grid=(r_pad // tile_r,),
        in_specs=[pl.BlockSpec((tile_r, hp2 * wout), lambda i: (i, 0))],
        out_specs=pl.BlockSpec((tile_r, hout * wout), lambda i: (i, 0)),
        out_shape=jax.ShapeDtypeStruct((r_pad, hout * wout), jnp.float32),
        compiler_params=pltpu.CompilerParams(dimension_semantics=("parallel",)),
    )(rows)

    # ------------------- assemble NCDHW output -------------------
    bn = bn_pad[:p, :cout].reshape(n, dout, hout, wout, cout)
    bn = jnp.transpose(bn, (0, 4, 1, 2, 3))                     # (N, Cout, D, Hout, W)
    pool = pool_rows[:r].reshape(n, cin, dout, hout, wout)      # (N, Cin,  D, Hout, W)
    return jnp.concatenate([pool, bn], axis=1)


def s2_reference(x, w, gamma, beta):
    """Pure-JAX reference of the PyTorch forward (training-mode BatchNorm)."""
    pool = lax.reduce_window(x, -jnp.inf, lax.max,
                             window_dimensions=(1, 1, KD, KH, KW),
                             window_strides=(1, 1, 1, 1, 1),
                             padding=((0, 0), (0, 0), (1, 1), (1, 1), (1, 1)))
    conv = lax.conv_general_dilated(x, w, window_strides=(1, 1, 1),
                                    padding=((1, 1), (1, 1), (1, 1)),
                                    dimension_numbers=('NCDHW', 'OIDHW', 'NCDHW'),
                                    precision=lax.Precision.HIGHEST)
    y = jnp.maximum(conv, 0.0)
    mean = jnp.mean(y, axis=(0, 2, 3, 4), keepdims=True)
    var = jnp.mean((y - mean) ** 2, axis=(0, 2, 3, 4), keepdims=True)
    bn = (y - mean) * lax.rsqrt(var + EPS)
    bn = bn * gamma.reshape(1, -1, 1, 1, 1) + beta.reshape(1, -1, 1, 1, 1)
    return jnp.concatenate([pool, bn], axis=1)


if __name__ == "__main__":
    key = jax.random.PRNGKey(0)
    k1, k2 = jax.random.split(key)

    # Small shapes consistent with the module (H must exceed 6 for a valid output).
    N, Cin, D, H, W = 2, 4, 8, 16, 8
    base = 8
    Cout = 3 * base

    x = jax.random.normal(k1, (N, Cin, D, H, W), jnp.float32)
    conv_w = jax.random.normal(k2, (Cout, Cin, KD, KH, KW), jnp.float32) * 0.05
    gamma = jnp.ones((Cout,), jnp.float32)   # BatchNorm3d default affine init
    beta = jnp.zeros((Cout,), jnp.float32)

    out = jax.block_until_ready(s2_forward(x, conv_w, gamma, beta))
    ref = jax.block_until_ready(s2_reference(x, conv_w, gamma, beta))

    assert out.shape == (N, Cin + Cout, D, H - 6, W), out.shape
    # Conv branch uses bf16 MXU inputs (f32 accumulation) vs. the f32 HIGHEST
    # reference, so allow a slightly wider absolute tolerance on the normalized
    # output; the pool branch is exact.
    max_err = float(jnp.max(jnp.abs(out - ref)))
    assert jnp.allclose(out, ref, atol=3e-2, rtol=2e-2), max_err
    print("KERNEL_OK")
</pallas_src>

<mosaic_0001>
module attributes {stable_mosaic.version = 11 : i64} {
  func.func @_conv_stats_kernel(%arg0: i32, %arg1: memref<256x324xbf16, #tpu.memory_space<vmem>>, %arg2: memref<324x128xbf16, #tpu.memory_space<vmem>>, %arg3: memref<256x128xf32, #tpu.memory_space<vmem>>, %arg4: memref<1x128xf32, #tpu.memory_space<vmem>>, %arg5: memref<1x128xf32, #tpu.memory_space<vmem>>) attributes {dimension_semantics = [#tpu.dimension_semantics<arbitrary>], iteration_bounds = array<i64: 5>, scalar_prefetch = 0 : i64, scratch_operands = 0 : i64, tpu.core_type = #tpu.core_type<tc>, window_params = [{transform_indices = @transform_0, window_bounds = array<i64: 256, 324>}, {pipeline_mode = #tpu.pipeline_mode<synchronous>, transform_indices = @transform_1, window_bounds = array<i64: 324, 128>}, {transform_indices = @transform_2, window_bounds = array<i64: 256, 128>}, {pipeline_mode = #tpu.pipeline_mode<synchronous>, transform_indices = @transform_3, window_bounds = array<i64: 1, 128>}, {pipeline_mode = #tpu.pipeline_mode<synchronous>, transform_indices = @transform_4, window_bounds = array<i64: 1, 128>}]} {
    %c0_i32 = arith.constant 0 : i32
    %0 = arith.cmpi eq, %arg0, %c0_i32 : i32
    %1 = arith.extui %0 : i1 to i32
    %c0_i32_0 = arith.constant 0 : i32
    %2 = arith.cmpi ne, %1, %c0_i32_0 : i32
    scf.if %2 {
      %cst_17 = arith.constant 0.000000e+00 : f32
      %20 = vector.broadcast %cst_17 : f32 to vector<1x128xf32>
      %c0_18 = arith.constant 0 : index
      %c0_19 = arith.constant 0 : index
      %21 = vector.load %arg4[%c0_18, %c0_19] : memref<1x128xf32, #tpu.memory_space<vmem>>, vector<1x128xf32>
      tpu.vector_store %arg4[%c0_18, %c0_19], %20 {strides = array<i32>} : memref<1x128xf32, #tpu.memory_space<vmem>>, vector<1x128xf32>,
      %cst_20 = arith.constant 0.000000e+00 : f32
      %22 = vector.broadcast %cst_20 : f32 to vector<1x128xf32>
      %c0_21 = arith.constant 0 : index
      %c0_22 = arith.constant 0 : index
      %23 = vector.load %arg5[%c0_21, %c0_22] : memref<1x128xf32, #tpu.memory_space<vmem>>, vector<1x128xf32>
      tpu.vector_store %arg5[%c0_21, %c0_22], %22 {strides = array<i32>} : memref<1x128xf32, #tpu.memory_space<vmem>>, vector<1x128xf32>,
    } else {
    }
    %c0 = arith.constant 0 : index
    %c0_1 = arith.constant 0 : index
    %3 = vector.load %arg1[%c0, %c0_1] : memref<256x324xbf16, #tpu.memory_space<vmem>>, vector<256x324xbf16>
    %c0_2 = arith.constant 0 : index
    %c0_3 = arith.constant 0 : index
    %4 = vector.load %arg2[%c0_2, %c0_3] : memref<324x128xbf16, #tpu.memory_space<vmem>>, vector<324x128xbf16>
    %cst = arith.constant dense<0.000000e+00> : vector<256x128xf32>
    %5 = tpu.matmul %3, %4, %cst {dimension_numbers = #tpu.dot_dimension_numbers<[1], [0], [0], [1], [0, 0, 1, 1], [], []>} : vector<256x324xbf16>, vector<324x128xbf16>, vector<256x128xf32> -> vector<256x128xf32>
    %cst_4 = arith.constant 0.000000e+00 : f32
    %6 = vector.broadcast %cst_4 : f32 to vector<256x128xf32>
    %7 = arith.maximumf %5, %6 : vector<256x128xf32>
    %c0_5 = arith.constant 0 : index
    %c0_6 = arith.constant 0 : index
    %8 = vector.load %arg3[%c0_5, %c0_6] : memref<256x128xf32, #tpu.memory_space<vmem>>, vector<256x128xf32>
    tpu.vector_store %arg3[%c0_5, %c0_6], %7 {strides = array<i32>} : memref<256x128xf32, #tpu.memory_space<vmem>>, vector<256x128xf32>,
    %c0_7 = arith.constant 0 : index
    %c0_8 = arith.constant 0 : index
    %9 = vector.load %arg4[%c0_7, %c0_8] : memref<1x128xf32, #tpu.memory_space<vmem>>, vector<1x128xf32>
    %cst_9 = arith.constant dense<0.000000e+00> : vector<128xf32>
    %10 = vector.multi_reduction <add>, %7, %cst_9 [0] : vector<256x128xf32> to vector<128xf32>
    %11 = vector.shape_cast %10 : vector<128xf32> to vector<1x128xf32>
    %12 = arith.addf %9, %11 : vector<1x128xf32>
    %c0_10 = arith.constant 0 : index
    %c0_11 = arith.constant 0 : index
    %13 = vector.load %arg4[%c0_10, %c0_11] : memref<1x128xf32, #tpu.memory_space<vmem>>, vector<1x128xf32>
    tpu.vector_store %arg4[%c0_10, %c0_11], %12 {strides = array<i32>} : memref<1x128xf32, #tpu.memory_space<vmem>>, vector<1x128xf32>,
    %c0_12 = arith.constant 0 : index
    %c0_13 = arith.constant 0 : index
    %14 = vector.load %arg5[%c0_12, %c0_13] : memref<1x128xf32, #tpu.memory_space<vmem>>, vector<1x128xf32>
    %15 = arith.mulf %7, %7 : vector<256x128xf32>
    %cst_14 = arith.constant dense<0.000000e+00> : vector<128xf32>
    %16 = vector.multi_reduction <add>, %15, %cst_14 [0] : vector<256x128xf32> to vector<128xf32>
    %17 = vector.shape_cast %16 : vector<128xf32> to vector<1x128xf32>
    %18 = arith.addf %14, %17 : vector<1x128xf32>
    %c0_15 = arith.constant 0 : index
    %c0_16 = arith.constant 0 : index
    %19 = vector.load %arg5[%c0_15, %c0_16] : memref<1x128xf32, #tpu.memory_space<vmem>>, vector<1x128xf32>
    tpu.vector_store %arg5[%c0_15, %c0_16], %18 {strides = array<i32>} : memref<1x128xf32, #tpu.memory_space<vmem>>, vector<1x128xf32>,
    return
  }
  func.func @transform_0(%arg0: i32) -> (i32, i32) {
    %c0_i32 = arith.constant 0 : i32
    %c0_i32_0 = arith.constant 0 : i32
    return %arg0, %c0_i32 : i32, i32
  }
  func.func @transform_1(%arg0: i32) -> (i32, i32) {
    %c0_i32 = arith.constant 0 : i32
    %c0_i32_0 = arith.constant 0 : i32
    %c0_i32_1 = arith.constant 0 : i32
    return %c0_i32, %c0_i32_0 : i32, i32
  }
  func.func @transform_2(%arg0: i32) -> (i32, i32) {
    %c0_i32 = arith.constant 0 : i32
    %c0_i32_0 = arith.constant 0 : i32
    return %arg0, %c0_i32 : i32, i32
  }
  func.func @transform_3(%arg0: i32) -> (i32, i32) {
    %c0_i32 = arith.constant 0 : i32
    %c0_i32_0 = arith.constant 0 : i32
    %c0_i32_1 = arith.constant 0 : i32
    return %c0_i32, %c0_i32_0 : i32, i32
  }
  func.func @transform_4(%arg0: i32) -> (i32, i32) {
    %c0_i32 = arith.constant 0 : i32
    %c0_i32_0 = arith.constant 0 : i32
    %c0_i32_1 = arith.constant 0 : i32
    return %c0_i32, %c0_i32_0 : i32, i32
  }
}

module attributes {stable_mosaic.version = 11 : i64} {
  func.func @_bn_apply_kernel(%arg0: i32, %arg1: memref<256x128xf32, #tpu.memory_space<vmem>>, %arg2: memref<1x128xf32, #tpu.memory_space<vmem>>, %arg3: memref<1x128xf32, #tpu.memory_space<vmem>>, %arg4: memref<256x128xf32, #tpu.memory_space<vmem>>) attributes {dimension_semantics = [#tpu.dimension_semantics<parallel>], iteration_bounds = array<i64: 5>, scalar_prefetch = 0 : i64, scratch_operands = 0 : i64, tpu.core_type = #tpu.core_type<tc>, window_params = [{transform_indices = @transform_0, window_bounds = array<i64: 256, 128>}, {pipeline_mode = #tpu.pipeline_mode<synchronous>, transform_indices = @transform_1, window_bounds = array<i64: 1, 128>}, {pipeline_mode = #tpu.pipeline_mode<synchronous>, transform_indices = @transform_2, window_bounds = array<i64: 1, 128>}, {transform_indices = @transform_3, window_bounds = array<i64: 256, 128>}]} {
    %c0 = arith.constant 0 : index
    %c0_0 = arith.constant 0 : index
    %0 = vector.load %arg1[%c0, %c0_0] : memref<256x128xf32, #tpu.memory_space<vmem>>, vector<256x128xf32>
    %c0_1 = arith.constant 0 : index
    %c0_2 = arith.constant 0 : index
    %1 = vector.load %arg2[%c0_1, %c0_2] : memref<1x128xf32, #tpu.memory_space<vmem>>, vector<1x128xf32>
    %2 = vector.broadcast %1 : vector<1x128xf32> to vector<256x128xf32>
    %3 = arith.mulf %0, %2 : vector<256x128xf32>
    %c0_3 = arith.constant 0 : index
    %c0_4 = arith.constant 0 : index
    %4 = vector.load %arg3[%c0_3, %c0_4] : memref<1x128xf32, #tpu.memory_space<vmem>>, vector<1x128xf32>
    %5 = vector.broadcast %4 : vector<1x128xf32> to vector<256x128xf32>
    %6 = arith.addf %3, %5 : vector<256x128xf32>
    %c0_5 = arith.constant 0 : index
    %c0_6 = arith.constant 0 : index
    %7 = vector.load %arg4[%c0_5, %c0_6] : memref<256x128xf32, #tpu.memory_space<vmem>>, vector<256x128xf32>
    tpu.vector_store %arg4[%c0_5, %c0_6], %6 {strides = array<i32>} : memref<256x128xf32, #tpu.memory_space<vmem>>, vector<256x128xf32>,
    return
  }
  func.func @transform_0(%arg0: i32) -> (i32, i32) {
    %c0_i32 = arith.constant 0 : i32
    %c0_i32_0 = arith.constant 0 : i32
    return %arg0, %c0_i32 : i32, i32
  }
  func.func @transform_1(%arg0: i32) -> (i32, i32) {
    %c0_i32 = arith.constant 0 : i32
    %c0_i32_0 = arith.constant 0 : i32
    %c0_i32_1 = arith.constant 0 : i32
    return %c0_i32, %c0_i32_0 : i32, i32
  }
  func.func @transform_2(%arg0: i32) -> (i32, i32) {
    %c0_i32 = arith.constant 0 : i32
    %c0_i32_0 = arith.constant 0 : i32
    %c0_i32_1 = arith.constant 0 : i32
    return %c0_i32, %c0_i32_0 : i32, i32
  }
  func.func @transform_3(%arg0: i32) -> (i32, i32) {
    %c0_i32 = arith.constant 0 : i32
    %c0_i32_0 = arith.constant 0 : i32
    return %arg0, %c0_i32 : i32, i32
  }
}

module attributes {stable_mosaic.version = 11 : i64} {
  func.func @_pool_h_kernel(%arg0: i32, %arg1: memref<64x144xf32, #tpu.memory_space<vmem>>, %arg2: memref<64x80xf32, #tpu.memory_space<vmem>>) attributes {dimension_semantics = [#tpu.dimension_semantics<parallel>], iteration_bounds = array<i64: 1>, scalar_prefetch = 0 : i64, scratch_operands = 0 : i64, tpu.core_type = #tpu.core_type<tc>, window_params = [{transform_indices = @transform_0, window_bounds = array<i64: 64, 144>}, {transform_indices = @transform_1, window_bounds = array<i64: 64, 80>}]} {
    %c0 = arith.constant 0 : index
    %c0_0 = arith.constant 0 : index
    %0 = vector.load %arg1[%c0, %c0_0] : memref<64x144xf32, #tpu.memory_space<vmem>>, vector<64x80xf32>
    %c0_1 = arith.constant 0 : index
    %c8 = arith.constant 8 : index
    %1 = vector.load %arg1[%c0_1, %c8] : memref<64x144xf32, #tpu.memory_space<vmem>>, vector<64x80xf32>
    %2 = arith.maximumf %0, %1 : vector<64x80xf32>
    %c0_2 = arith.constant 0 : index
    %c16 = arith.constant 16 : index
    %3 = vector.load %arg1[%c0_2, %c16] : memref<64x144xf32, #tpu.memory_space<vmem>>, vector<64x80xf32>
    %4 = arith.maximumf %2, %3 : vector<64x80xf32>
    %c0_3 = arith.constant 0 : index
    %c24 = arith.constant 24 : index
    %5 = vector.load %arg1[%c0_3, %c24] : memref<64x144xf32, #tpu.memory_space<vmem>>, vector<64x80xf32>
    %6 = arith.maximumf %4, %5 : vector<64x80xf32>
    %c0_4 = arith.constant 0 : index
    %c32 = arith.constant 32 : index
    %7 = vector.load %arg1[%c0_4, %c32] : memref<64x144xf32, #tpu.memory_space<vmem>>, vector<64x80xf32>
    %8 = arith.maximumf %6, %7 : vector<64x80xf32>
    %c0_5 = arith.constant 0 : index
    %c40 = arith.constant 40 : index
    %9 = vector.load %arg1[%c0_5, %c40] : memref<64x144xf32, #tpu.memory_space<vmem>>, vector<64x80xf32>
    %10 = arith.maximumf %8, %9 : vector<64x80xf32>
    %c0_6 = arith.constant 0 : index
    %c48 = arith.constant 48 : index
    %11 = vector.load %arg1[%c0_6, %c48] : memref<64x144xf32, #tpu.memory_space<vmem>>, vector<64x80xf32>
    %12 = arith.maximumf %10, %11 : vector<64x80xf32>
    %c0_7 = arith.constant 0 : index
    %c56 = arith.constant 56 : index
    %13 = vector.load %arg1[%c0_7, %c56] : memref<64x144xf32, #tpu.memory_space<vmem>>, vector<64x80xf32>
    %14 = arith.maximumf %12, %13 : vector<64x80xf32>
    %c0_8 = arith.constant 0 : index
    %c64 = arith.constant 64 : index
    %15 = vector.load %arg1[%c0_8, %c64] : memref<64x144xf32, #tpu.memory_space<vmem>>, vector<64x80xf32>
    %16 = arith.maximumf %14, %15 : vector<64x80xf32>
    %c0_9 = arith.constant 0 : index
    %c0_10 = arith.constant 0 : index
    %17 = vector.load %arg2[%c0_9, %c0_10] : memref<64x80xf32, #tpu.memory_space<vmem>>, vector<64x80xf32>
    tpu.vector_store %arg2[%c0_9, %c0_10], %16 {strides = array<i32>} : memref<64x80xf32, #tpu.memory_space<vmem>>, vector<64x80xf32>,
    return
  }
  func.func @transform_0(%arg0: i32) -> (i32, i32) {
    %c0_i32 = arith.constant 0 : i32
    %c0_i32_0 = arith.constant 0 : i32
    return %arg0, %c0_i32 : i32, i32
  }
  func.func @transform_1(%arg0: i32) -> (i32, i32) {
    %c0_i32 = arith.constant 0 : i32
    %c0_i32_0 = arith.constant 0 : i32
    return %arg0, %c0_i32 : i32, i32
  }
}

</mosaic_0001>

<bundles_post_ra>
// kernel: s2_forward.3
= control target key start
LH: loop header
LB: loop body
LE: loop exit
PB: predicated region body
PF: predicated region fallthrough
CT: control target
= control target key end

     0   :  { %s1671_s15 = smov 0   ;;  %s2044_s0 = inlined_call_operand.vmem [shape: bf16[1280,324], index: 0, kind: input, shape index: {}]   ;;  %s2045_s1 = inlined_call_operand.vmem [shape: bf16[324,128], index: 1, kind: input, shape index: {}]   ;;  %s2046_s2 = inlined_call_operand.vmem [shape: f32[1280,128], index: 2, kind: output, shape index: {0}]   ;;  %s2047_s3 = inlined_call_operand.vmem [shape: f32[1,128], index: 3, kind: output, shape index: {1}]   ;;  %s2048_s4 = inlined_call_operand.vmem [shape: f32[1,128], index: 4, kind: output, shape index: {2}]  }
   0x1 LB: > { %s1238_s16 = sadd.s32 4294967295, %s1643_s15   ;;  %p1242_p0 = scmp.ge.s32.totalorder %s1643_s15, 1  ;;  %s1643_s15 = sphi %s1671_s15, %s15_s15  }
   0x2   : > { %p159_p1 = scmp.lt.s32.totalorder %s1643_s15, 6 }
   0x4   : > { %p160_p2 = pnand %p1242_p0, %p159_p1 }
   0x5   : > { %s1243_s17 = sshll.u32 (!%p160_p2), %s1238_s16, 5  ;;  %p1247_p4 = scmp.ne.s32.totalorder (!%p160_p2), %s1238_s16, 0 }
   0x6   : > { %163 = sbr.rel (%p160_p2) target bundleno = 411 (0x19b), region = 28  ;;  %p187_p3 = scmp.lt.s32.totalorder (!%p160_p2), %s1243_s17, 159 }
   0xb   : > { %s2050_s17 = smov (!%p187_p3, %s1243_s17), 159  ;;  %203 = sbr.rel (%p1247_p4) target bundleno = 19 (0x13), region = 32 }
   0xc   : > { %s1627_s18 = smul.u32 12, %s2050_s17  ;;  %s1246_s19 = sshll.u32 %s2050_s17, 3 }
   0xd   : > { %s1682_s22 = scalar_lea.vmem %s2046_s2, %s1246_s19 }
   0xe   : > { %s1687_s25 = scalar_lea.vmem %s2044_s0, %s1627_s18 }
  0x10   : > { %v1645_v0 = vmov 0.0  }
  0x11   : > { %204 = vst [vmem:[%s2047_s3] sm:$0x1] %v1645_v0 }
  0x12   : > { %205 = vst [vmem:[%s2048_s4] sm:$0x1] %v1645_v0 }
  0x13 PF: > { %v1593_v1 = vld [vmem:[%s2045_s1 + $0x38] sm:$0xff]  ;;  %v310_v3 = vld [vmem:[%s2045_s1 + $0xa0] sm:$0x3]  ;;  %vm723_vm0 = vcmask 1041408   ;;  %v1592_v5 = vld [vmem:[%s2045_s1 + $0x30] sm:$0xff]  ;;  %vm674_vm1 = vcmask 556032  }
  0x14   : > { %v1701_v2 = vld [vmem:[%s2045_s1 + $0x78] sm:$0xff]  ;;  %v632_v4 = vunpack.c.l.b16 %v310_v3  ;;  %727 = vmatpush.bf16.msra.mxu0 %v1593_v1  ;;  %1606 = vmatpush.bf16.msra.mxu3 %v1593_v1  ;;  %v1713_v7 = vld [vmem:[%s2045_s1 + $0x70] sm:$0xff]  ;;  %v1591_v10 = vld [vmem:[%s2045_s1 + $0x28] sm:$0xff] }
  0x15   : > { %816 = vmatpush.bf16.msra.mxu1 %v1701_v2  ;;  %v1721_v9 = vld [vmem:[%s2045_s1 + $0x98] sm:$0xff]  ;;  %v1599_v11 = vld [vmem:[%s2045_s1 + $0x68] sm:$0xff]  ;;  %v1734_v12 = vld [vmem:[%s2045_s1 + $0x90] sm:$0xff] }
  0x16   : > { %v653_v6 = vpack.c.b16 %v632_v4, %v632_v4  ;;  %v1590_v13 = vld [vmem:[%s2045_s1 + $0x20] sm:$0xff]  ;;  %v1746_v15 = vld [vmem:[%s2045_s1 + $0x88] sm:$0xff]  ;;  %v1589_v16 = vld [vmem:[%s2045_s1 + $0x18] sm:$0xff] }
  0x17   : > { %v1598_v14 = vld [vmem:[%s2045_s1 + $0x60] sm:$0xff]  ;;  %v1597_v17 = vld [vmem:[%s2045_s1 + $0x58] sm:$0xff]  ;;  %v1588_v19 = vld [vmem:[%s2045_s1 + $0x10] sm:$0xff] }
  0x18   : > { %v1715_v8 = vsel %vm723_vm0, %v653_v6, 0  ;;  %728 = vmatpush.bf16.msra.mxu0 %v1592_v5  ;;  %1607 = vmatpush.bf16.msra.mxu3 %v1592_v5  ;;  %v1757_v18 = vld [vmem:[%s2045_s1 + $0x80] sm:$0xff]  ;;  %v1258_v20 = vld [vmem:[%s1687_s25 + $0x8] sm:$0xf]  ;;  %v1540_v21 = vld [vmem:[%s1687_s25 + $0x10] sm:$0xf0] }
  0x19   : > { %908 = vmatpush.bf16.msra.mxu2 %v1715_v8  ;;  %817 = vmatpush.bf16.msra.mxu1 %v1713_v7  ;;  %v1596_v22 = vld [vmem:[%s2045_s1 + $0x50] sm:$0xff]  ;;  %v1259_v23 = vor.u32 %v1540_v21, %v1258_v20  ;;  %v1587_v24 = vld [vmem:[%s2045_s1 + $0x8] sm:$0xff]  ;;  %v1586_v26 = vld [vmem:[%s2045_s1] sm:$0xff] }
  0x1a   : > { %v1595_v25 = vld [vmem:[%s2045_s1 + $0x48] sm:$0xff]  ;;  %v1594_v27 = vld [vmem:[%s2045_s1 + $0x40] sm:$0xff]  ;;  %v1252_v33 = vld [vmem:[%s1687_s25 + $0xc] sm:$0xf0] }
  0x1b   : > { %v1250_v28 = vld [vmem:[%s1687_s25] sm:$0xf]  ;;  %v1539_v29 = vld [vmem:[%s1687_s25 + $0x8] sm:$0xf0]  ;;  %v1538_v32 = vld [vmem:[%s1687_s25 + $0x4] sm:$0xf] }
  0x1c   : > { %729 = vmatpush.bf16.msra.mxu0 %v1591_v10  ;;  %1608 = vmatpush.bf16.msra.mxu3 %v1591_v10  ;;  %v1394_v30 = vld [vmem:[%s1687_s25 + $0x120] sm:$0xf]  ;;  %v1575_v31 = vld [vmem:[%s1687_s25 + $0x128] sm:$0xf0]  ;;  %v1251_v34 = vor.u32 %v1539_v29, %v1250_v28  ;;  %v1255_v36 = vor.u32 %v1538_v32, %v1252_v33  ;;  %v1262_v40 = vld [vmem:[%s1687_s25 + $0x18] sm:$0xf] }
  0x1d   : > { %909 = vmatpush.bf16.msra.mxu2 %v1721_v9  ;;  %818 = vmatpush.bf16.msra.mxu1 %v1599_v11  ;;  %v1395_v35 = vor.u32 %v1575_v31, %v1394_v30  ;;  %v1270_v37 = vld [vmem:[%s1687_s25 + $0x20] sm:$0xf]  ;;  %v1543_v38 = vld [vmem:[%s1687_s25 + $0x28] sm:$0xf0]  ;;  %v1542_v41 = vld [vmem:[%s1687_s25 + $0x20] sm:$0xf0] }
  0x1e   : > { %v1271_v39 = vor.u32 %v1543_v38, %v1270_v37  ;;  %v1406_v42 = vld [vmem:[%s1687_s25 + $0x138] sm:$0xf]  ;;  %v1578_v43 = vld [vmem:[%s1687_s25 + $0x140] sm:$0xf0]  ;;  %v1541_v44 = vld [vmem:[%s1687_s25 + $0x1c] sm:$0xf]  ;;  %v1263_v46 = vor.u32 %v1542_v41, %v1262_v40 }
  0x1f   : > { %v1264_v45 = vld [vmem:[%s1687_s25 + $0x24] sm:$0xf0]  ;;  %v1407_v47 = vor.u32 %v1578_v43, %v1406_v42  ;;  %v1282_v49 = vld [vmem:[%s1687_s25 + $0x38] sm:$0xf]  ;;  %v1546_v50 = vld [vmem:[%s1687_s25 + $0x40] sm:$0xf0] }
  0x20   : > { %730 = vmatpush.bf16.msra.mxu0 %v1590_v13  ;;  %1609 = vmatpush.bf16.msra.mxu3 %v1590_v13  ;;  %v1267_v48 = vor.u32 %v1541_v44, %v1264_v45  ;;  %v1283_v51 = vor.u32 %v1546_v50, %v1282_v49  ;;  %v1274_v52 = vld [vmem:[%s1687_s25 + $0x30] sm:$0xf]  ;;  %v1545_v53 = vld [vmem:[%s1687_s25 + $0x38] sm:$0xf0]  ;;  %v1544_v56 = vld [vmem:[%s1687_s25 + $0x34] sm:$0xf] }
  0x21   : > { %910 = vmatpush.bf16.msra.mxu2 %v1734_v12  ;;  %819 = vmatpush.bf16.msra.mxu1 %v1598_v14  ;;  %v1418_v54 = vld [vmem:[%s1687_s25 + $0x150] sm:$0xf]  ;;  %v1581_v55 = vld [vmem:[%s1687_s25 + $0x158] sm:$0xf0]  ;;  %v1276_v57 = vld [vmem:[%s1687_s25 + $0x3c] sm:$0xf0]  ;;  %v1275_v58 = vor.u32 %v1545_v53, %v1274_v52 }
  0x22   : > { %v1419_v59 = vor.u32 %v1581_v55, %v1418_v54  ;;  %v1279_v60 = vor.u32 %v1544_v56, %v1276_v57  ;;  %v1294_v61 = vld [vmem:[%s1687_s25 + $0x50] sm:$0xf]  ;;  %v1549_v62 = vld [vmem:[%s1687_s25 + $0x58] sm:$0xf0]  ;;  %v1286_v0 = vld [vmem:[%s1687_s25 + $0x48] sm:$0xf] }
  0x23   : > { %v1295_v63 = vor.u32 %v1549_v62, %v1294_v61  ;;  %v1548_v1 = vld [vmem:[%s1687_s25 + $0x50] sm:$0xf0]  ;;  %v1547_v4 = vld [vmem:[%s1687_s25 + $0x4c] sm:$0xf]  ;;  %v1288_v5 = vld [vmem:[%s1687_s25 + $0x54] sm:$0xf0] }
  0x24   : > { %731 = vmatpush.bf16.msra.mxu0 %v1589_v16  ;;  %1610 = vmatpush.bf16.msra.mxu3 %v1589_v16  ;;  %v1584_v3 = vld [vmem:[%s1687_s25 + $0x170] sm:$0xf0]  ;;  %v1287_v6 = vor.u32 %v1548_v1, %v1286_v0  ;;  %v1551_v13 = vld [vmem:[%s1687_s25 + $0x68] sm:$0xf0]  ;;  %v1574_v16 = vld [vmem:[%s1687_s25 + $0x124] sm:$0xf] }
  0x25   : > { %911 = vmatpush.bf16.msra.mxu2 %v1746_v15  ;;  %820 = vmatpush.bf16.msra.mxu1 %v1597_v17  ;;  %v1552_v10 = vld [vmem:[%s1687_s25 + $0x70] sm:$0xf0]  ;;  %v1318_v21 = vld [vmem:[%s1687_s25 + $0x80] sm:$0xf]  ;;  %v1577_v28 = vld [vmem:[%s1687_s25 + $0x13c] sm:$0xf] }
  0x26   : > { %v1408_v29 = vld [vmem:[%s1687_s25 + $0x144] sm:$0xf0]  ;;  %v1330_v33 = vld [vmem:[%s1687_s25 + $0x98] sm:$0xf]  ;;  %v1557_v37 = vld [vmem:[%s1687_s25 + $0x98] sm:$0xf0] }
  0x27   : > { %v1411_v32 = vor.u32 %v1577_v28, %v1408_v29  ;;  %v1556_v38 = vld [vmem:[%s1687_s25 + $0x94] sm:$0xf]  ;;  %v1420_v41 = vld [vmem:[%s1687_s25 + $0x15c] sm:$0xf0]  ;;  %v1342_v45 = vld [vmem:[%s1687_s25 + $0xb0] sm:$0xf] }
  0x28   : > { %732 = vmatpush.bf16.msra.mxu0 %v1588_v19  ;;  %1611 = vmatpush.bf16.msra.mxu3 %v1588_v19  ;;  %v1580_v40 = vld [vmem:[%s1687_s25 + $0x154] sm:$0xf]  ;;  %v1559_v50 = vld [vmem:[%s1687_s25 + $0xac] sm:$0xf]  ;;  %v1432_v53 = vld [vmem:[%s1687_s25 + $0x174] sm:$0xf0] }
  0x29   : > { %912 = vmatpush.bf16.msra.mxu2 %v1757_v18  ;;  %821 = vmatpush.bf16.msra.mxu1 %v1596_v22  ;;  %v1423_v44 = vor.u32 %v1580_v40, %v1420_v41  ;;  %v1560_v49 = vld [vmem:[%s1687_s25 + $0xb0] sm:$0xf0]  ;;  %v1583_v52 = vld [vmem:[%s1687_s25 + $0x16c] sm:$0xf]  ;;  %v1354_v57 = vld [vmem:[%s1687_s25 + $0xc8] sm:$0xf] }
  0x2a   : > { %v1435_v56 = vor.u32 %v1583_v52, %v1432_v53  ;;  %v1563_v61 = vld [vmem:[%s1687_s25 + $0xc8] sm:$0xf0]  ;;  %v1562_v62 = vld [vmem:[%s1687_s25 + $0xc4] sm:$0xf]  ;;  %v1414_v0 = vld [vmem:[%s1687_s25 + $0x140] sm:$0xf] }
  0x2b   : > { %v1579_v1 = vld [vmem:[%s1687_s25 + $0x148] sm:$0xf0]  ;;  %v1378_v40 = vld [vmem:[%s1687_s25 + $0xf8] sm:$0xf]  ;;  %v1570_v41 = vld [vmem:[%s1687_s25 + $0x100] sm:$0xf0] }
  0x2c   : > { %1520 = vmatmul.msk.bf16.vlgmr.msra.gmra.mxu2 %vm674_vm1, %v1259_v23  ;;  %733 = vmatpush.bf16.msra.mxu0 %v1587_v24  ;;  %v1370_v53 = vld [vmem:[%s1687_s25 + $0xf0] sm:$0xf] }
  0x2d   : > { %1612 = vmatpush.bf16.msra.mxu3 %v1587_v24  ;;  %822 = vmatpush.bf16.msra.mxu1 %v1595_v25  ;;  %v1310_v24 = vld [vmem:[%s1687_s25 + $0x78] sm:$0xf] }
  0x30   : > { %734 = vmatpush.bf16.msra.mxu0 %v1586_v26 }
  0x31   : > { %1613 = vmatpush.bf16.msra.mxu3 %v1586_v26  ;;  %823 = vmatpush.bf16.msra.mxu1 %v1594_v27  ;;  %v1553_v26 = vld [vmem:[%s1687_s25 + $0x7c] sm:$0xf] }
  0x33   : > { %735 = vmatmul.bf16.vlgmr.msra.gmra.mxu0 %v1251_v34  ;;  %v1558_v34 = vld [vmem:[%s1687_s25 + $0xa0] sm:$0xf0] }
  0x34   : > { %795 = vmatmul.bf16.vlgmr.msra.gmra.mxu3 %v1395_v35  ;;  %824 = vmatmul.bf16.vlgmr.msra.gmra.mxu1 %v1255_v36  ;;  %v1331_v35 = vor.u32 %v1558_v34, %v1330_v33  ;;  %v1322_v36 = vld [vmem:[%s1687_s25 + $0x90] sm:$0xf] }
  0x35   : > { %1614 = vmatpush.bf16.msrb.mxu3 %v1701_v2  ;;  %v1430_v2 = vld [vmem:[%s1687_s25 + $0x168] sm:$0xf]  ;;  %v1323_v42 = vor.u32 %v1557_v37, %v1322_v36 }
  0x39   : > { %1615 = vmatpush.bf16.msrb.mxu3 %v1713_v7  ;;  %v1431_v7 = vor.u32 %v1584_v3, %v1430_v2 }
  0x3c   : > { %1521 = vmatmul.msk.bf16.gmra.mxu2 %vm674_vm1, %v1271_v39  ;;  %v1324_v39 = vld [vmem:[%s1687_s25 + $0x9c] sm:$0xf0] }
  0x3d   : > { %1616 = vmatpush.bf16.msrb.mxu3 %v1599_v11  ;;  %v1327_v43 = vor.u32 %v1556_v38, %v1324_v39 }
  0x41   : > { %1617 = vmatpush.bf16.msrb.mxu3 %v1598_v14  ;;  %v1550_v14 = vld [vmem:[%s1687_s25 + $0x64] sm:$0xf] }
  0x43   : > { %740 = vmatmul.bf16.gmra.mxu0 %v1263_v46  ;;  %v1561_v46 = vld [vmem:[%s1687_s25 + $0xb8] sm:$0xf0] }
  0x44   : > { %800 = vmatmul.bf16.gmra.mxu3 %v1407_v47  ;;  %829 = vmatmul.bf16.gmra.mxu1 %v1267_v48  ;;  %v1343_v47 = vor.u32 %v1561_v46, %v1342_v45  ;;  %v1334_v48 = vld [vmem:[%s1687_s25 + $0xa8] sm:$0xf]  ;;  %v1379_v45 = vor.u32 %v1570_v41, %v1378_v40  ;;  %v1576_v40 = vld [vmem:[%s1687_s25 + $0x130] sm:$0xf0] }
  0x45   : > { %1618 = vmatpush.bf16.msrb.mxu3 %v1597_v17  ;;  %v1396_v17 = vld [vmem:[%s1687_s25 + $0x12c] sm:$0xf0]  ;;  %v1335_v54 = vor.u32 %v1560_v49, %v1334_v48 }
  0x46   : > { %v1399_v20 = vor.u32 %v1574_v16, %v1396_v17 }
  0x49   : > { %1619 = vmatpush.bf16.msrb.mxu3 %v1596_v22  ;;  %v1555_v22 = vld [vmem:[%s1687_s25 + $0x88] sm:$0xf0] }
  0x4a   : > { %v1319_v23 = vor.u32 %v1555_v22, %v1318_v21  ;;  %v1566_v21 = vld [vmem:[%s1687_s25 + $0xe0] sm:$0xf0]  ;;  %v1565_v22 = vld [vmem:[%s1687_s25 + $0xdc] sm:$0xf] }
  0x4c   : > { %1522 = vmatmul.msk.bf16.gmra.mxu2 %vm674_vm1, %v1283_v51  ;;  %v1336_v51 = vld [vmem:[%s1687_s25 + $0xb4] sm:$0xf0] }
  0x4d   : > { %1620 = vmatpush.bf16.msrb.mxu3 %v1595_v25  ;;  %v1554_v25 = vld [vmem:[%s1687_s25 + $0x80] sm:$0xf0]  ;;  %v1339_v55 = vor.u32 %v1559_v50, %v1336_v51 }
  0x4e   : > { %v1311_v30 = vor.u32 %v1554_v25, %v1310_v24  ;;  %v1426_v24 = vld [vmem:[%s1687_s25 + $0x158] sm:$0xf]  ;;  %v1582_v25 = vld [vmem:[%s1687_s25 + $0x160] sm:$0xf0] }
  0x51   : > { %1621 = vmatpush.bf16.msrb.mxu3 %v1594_v27  ;;  %v1312_v27 = vld [vmem:[%s1687_s25 + $0x84] sm:$0xf0] }
  0x52   : > { %v1315_v31 = vor.u32 %v1553_v26, %v1312_v27 }
  0x53   : > { %745 = vmatmul.bf16.gmra.mxu0 %v1275_v58  ;;  %v1564_v58 = vld [vmem:[%s1687_s25 + $0xd0] sm:$0xf0] }
  0x54   : > { %805 = vmatmul.bf16.gmra.mxu3 %v1419_v59  ;;  %834 = vmatmul.bf16.gmra.mxu1 %v1279_v60  ;;  %v1355_v59 = vor.u32 %v1564_v58, %v1354_v57  ;;  %v1346_v60 = vld [vmem:[%s1687_s25 + $0xc0] sm:$0xf]  ;;  %v1438_v57 = vld [vmem:[%s1687_s25 + $0x170] sm:$0xf]  ;;  %v1585_v58 = vld [vmem:[%s1687_s25 + $0x178] sm:$0xf0] }
  0x55   : > { %1622 = vmatpush.bf16.msra.mxu3 %v1715_v8  ;;  %v1291_v8 = vor.u32 %v1547_v4, %v1288_v5  ;;  %v1347_v3 = vor.u32 %v1563_v61, %v1346_v60 }
  0x59   : > { %1623 = vmatpush.bf16.msra.mxu3 %v1721_v9  ;;  %v1306_v9 = vld [vmem:[%s1687_s25 + $0x68] sm:$0xf] }
  0x5a   : > { %v1307_v11 = vor.u32 %v1552_v10, %v1306_v9  ;;  %v1366_v10 = vld [vmem:[%s1687_s25 + $0xe0] sm:$0xf] }
  0x5c   : > { %1523 = vmatmul.msk.bf16.gmra.mxu2 %vm674_vm1, %v1295_v63  ;;  %v1348_v63 = vld [vmem:[%s1687_s25 + $0xcc] sm:$0xf0] }
  0x5d   : > { %1624 = vmatpush.bf16.msra.mxu3 %v1734_v12  ;;  %v1298_v12 = vld [vmem:[%s1687_s25 + $0x60] sm:$0xf]  ;;  %v1351_v5 = vor.u32 %v1562_v62, %v1348_v63 }
  0x61   : > { %1625 = vmatpush.bf16.msra.mxu3 %v1746_v15  ;;  %v1300_v15 = vld [vmem:[%s1687_s25 + $0x6c] sm:$0xf0] }
  0x62   : > { %v1303_v19 = vor.u32 %v1550_v14, %v1300_v15 }
  0x63   : > { %750 = vmatmul.bf16.gmra.mxu0 %v1287_v6  ;;  %v1415_v6 = vor.u32 %v1579_v1, %v1414_v0 }
  0x64   : > { %810 = vmatmul.bf16.gmra.mxu3 %v1431_v7  ;;  %839 = vmatmul.bf16.gmra.mxu1 %v1291_v8 }
  0x65   : > { %1626 = vmatpush.bf16.msra.mxu3 %v1757_v18  ;;  %v1299_v18 = vor.u32 %v1551_v13, %v1298_v12 }
  0x6c   : > { %1524 = vmatmul.msk.bf16.gmra.mxu2 %vm674_vm1, %v1307_v11  ;;  %v1567_v11 = vld [vmem:[%s1687_s25 + $0xe8] sm:$0xf0] }
  0x6d   : > { %v1367_v15 = vor.u32 %v1567_v11, %v1366_v10 }
  0x73   : > { %755 = vmatmul.bf16.gmra.mxu0 %v1299_v18 }
  0x74   : > { %844 = vmatmul.bf16.gmra.mxu1 %v1303_v19  ;;  %884 = vmatmul.bf16.vlgmr.msrb.gmra.mxu3 %v1399_v20  ;;  %v1358_v19 = vld [vmem:[%s1687_s25 + $0xd8] sm:$0xf] }
  0x75   : > { %v1359_v29 = vor.u32 %v1566_v21, %v1358_v19 }
  0x7c   : > { %1525 = vmatmul.msk.bf16.gmra.mxu2 %vm674_vm1, %v1319_v23  ;;  %v1360_v23 = vld [vmem:[%s1687_s25 + $0xe4] sm:$0xf0] }
  0x83   : > { %760 = vmatmul.bf16.gmra.mxu0 %v1311_v30  ;;  %v1363_v30 = vor.u32 %v1565_v22, %v1360_v23  ;;  %v1382_v22 = vld [vmem:[%s1687_s25 + $0x108] sm:$0xf]  ;;  %v1572_v23 = vld [vmem:[%s1687_s25 + $0x110] sm:$0xf0] }
  0x84   : > { %849 = vmatmul.bf16.gmra.mxu1 %v1315_v31  ;;  %889 = vmatmul.bf16.gmra.mxu3 %v1411_v32 }
  0x8c   : > { %1526 = vmatmul.msk.bf16.gmra.mxu2 %vm674_vm1, %v1331_v35  ;;  %v1427_v35 = vor.u32 %v1582_v25, %v1426_v24  ;;  %v1571_v24 = vld [vmem:[%s1687_s25 + $0x10c] sm:$0xf]  ;;  %v1384_v25 = vld [vmem:[%s1687_s25 + $0x114] sm:$0xf0] }
  0x93   : > { %765 = vmatmul.bf16.gmra.mxu0 %v1323_v42 }
  0x94   : > { %854 = vmatmul.bf16.gmra.mxu1 %v1327_v43  ;;  %894 = vmatmul.bf16.gmra.mxu3 %v1423_v44 }
  0x9c   : > { %1527 = vmatmul.msk.bf16.gmra.mxu2 %vm674_vm1, %v1343_v47 }
  0xa3   : > { %770 = vmatmul.bf16.gmra.mxu0 %v1335_v54  ;;  %v1569_v54 = vld [vmem:[%s1687_s25 + $0xf8] sm:$0xf0] }
  0xa4   : > { %859 = vmatmul.bf16.gmra.mxu1 %v1339_v55  ;;  %899 = vmatmul.bf16.gmra.mxu3 %v1435_v56  ;;  %v1568_v55 = vld [vmem:[%s1687_s25 + $0xf4] sm:$0xf]  ;;  %v1372_v56 = vld [vmem:[%s1687_s25 + $0xfc] sm:$0xf0]  ;;  %v1371_v62 = vor.u32 %v1569_v54, %v1370_v53 }
  0xac   : > { %1528 = vmatmul.msk.bf16.gmra.mxu2 %vm674_vm1, %v1355_v59 }
  0xaf   : > { %v914_v2 = vpop.f32.mrf.mxu2 }
  0xb0   : > { %v736_v4 = vpop.f32.mrf.mxu0 }
  0xb1   : > { %v825_v7 = vpop.f32.mrf.mxu1 }
  0xb2   : > { %v826_v8 = vadd.f32 %v825_v7, %v736_v4 }
  0xb3   : > { %775 = vmatmul.bf16.gmra.mxu0 %v1347_v3  ;;  %v1439_v3 = vor.u32 %v1585_v58, %v1438_v57 }
  0xb4   : > { %v915_v9 = vadd.f32 %v914_v2, %v826_v8  ;;  %864 = vmatmul.bf16.gmra.mxu1 %v1351_v5  ;;  %1533 = vmatmul.msk.bf16.vlgmr.msra.gmra.mxu3 %vm674_vm1, %v1415_v6  ;;  %v1375_v2 = vor.u32 %v1568_v55, %v1372_v56  ;;  %v1390_v8 = vld [vmem:[%s1687_s25 + $0x110] sm:$0xf] }
  0xb6   : > { %v994_v12 = vmax.f32 %v915_v9, 0.0  ;;  %v1573_v9 = vld [vmem:[%s1687_s25 + $0x118] sm:$0xf0] }
  0xb7   : > { %v916_v13 = vpop.f32.mrf.mxu2  ;;  %v1870_v14 = vpop.f32.mrf.mxu3 }
  0xb8   : > { %1026 = vst [vmem:[%s1682_s22] sm:$0xff] %v994_v12  ;;  %v738_v16 = vpop.f32.mrf.mxu0  ;;  %v1099_v31 = vmul.f32 %v994_v12, %v994_v12 }
  0xb9   : > { %v827_v17 = vpop.f32.mrf.mxu1 }
  0xba   : > { %v828_v18 = vadd.f32 %v827_v17, %v738_v16 }
  0xbc   : > { %1529 = vmatmul.msk.bf16.gmra.mxu2 %vm674_vm1, %v1367_v15  ;;  %v917_v20 = vadd.f32 %v916_v13, %v828_v18  ;;  %v1391_v13 = vor.u32 %v1573_v9, %v1390_v8 }
  0xbe   : > { %v995_v26 = vmax.f32 %v917_v20, 0.0 }
  0xbf   : > { %v919_v27 = vpop.f32.mrf.mxu2  ;;  %v1880_v28 = vpop.f32.mrf.mxu3 }
  0xc0   : > { %1027 = vst [vmem:[%s1682_s22 + $0x8] sm:$0xff] %v995_v26  ;;  %v1059_v32 = vadd.f32 %v995_v26, %v994_v12  ;;  %v1100_v33 = vmul.f32 %v995_v26, %v995_v26  ;;  %v741_v34 = vpop.f32.mrf.mxu0 }
  0xc1   : > { %v830_v36 = vpop.f32.mrf.mxu1 }
  0xc2   : > { %v1131_v37 = vadd.f32 %v1100_v33, %v1099_v31  ;;  %v831_v38 = vadd.f32 %v830_v36, %v741_v34  ;;  %v1387_v34 = vor.u32 %v1571_v24, %v1384_v25 }
  0xc3   : > { %780 = vmatmul.bf16.gmra.mxu0 %v1359_v29 }
  0xc4   : > { %v920_v39 = vadd.f32 %v919_v27, %v831_v38  ;;  %869 = vmatmul.bf16.gmra.mxu1 %v1363_v30  ;;  %1534 = vmatmul.msk.bf16.gmra.mxu3 %vm674_vm1, %v1427_v35  ;;  %v1383_v30 = vor.u32 %v1572_v23, %v1382_v22 }
  0xc6   : > { %v996_v42 = vmax.f32 %v920_v39, 0.0  ;;  %v1402_v39 = vld [vmem:[%s1687_s25 + $0x128] sm:$0xf] }
  0xc7   : > { %v921_v43 = vpop.f32.mrf.mxu2  ;;  %v1886_v44 = vpop.f32.mrf.mxu3 }
  0xc8   : > { %1028 = vst [vmem:[%s1682_s22 + $0x10] sm:$0xff] %v996_v42  ;;  %v1060_v46 = vadd.f32 %v1059_v32, %v996_v42  ;;  %v1101_v47 = vmul.f32 %v996_v42, %v996_v42  ;;  %v743_v48 = vpop.f32.mrf.mxu0 }
  0xc9   : > { %v832_v49 = vpop.f32.mrf.mxu1 }
  0xca   : > { %v1132_v50 = vadd.f32 %v1131_v37, %v1101_v47  ;;  %v833_v51 = vadd.f32 %v832_v49, %v743_v48 }
  0xcc   : > { %1530 = vmatmul.msk.bf16.gmra.mxu2 %vm674_vm1, %v1379_v45  ;;  %v922_v52 = vadd.f32 %v921_v43, %v833_v51  ;;  %v1403_v45 = vor.u32 %v1576_v40, %v1402_v39 }
  0xce   : > { %v997_v59 = vmax.f32 %v922_v52, 0.0 }
  0xcf   : > { %v924_v60 = vpop.f32.mrf.mxu2  ;;  %v1896_v61 = vpop.f32.mrf.mxu3 }
  0xd0   : > { %1029 = vst [vmem:[%s1682_s22 + $0x18] sm:$0xff] %v997_v59  ;;  %v1061_v63 = vadd.f32 %v1060_v46, %v997_v59  ;;  %v1102_v0 = vmul.f32 %v997_v59, %v997_v59  ;;  %v746_v1 = vpop.f32.mrf.mxu0 }
  0xd1   : > { %v835_v4 = vpop.f32.mrf.mxu1 }
  0xd2   : > { %v1133_v5 = vadd.f32 %v1132_v50, %v1102_v0  ;;  %v836_v6 = vadd.f32 %v835_v4, %v746_v1 }
  0xd3   : > { %785 = vmatmul.bf16.gmra.mxu0 %v1371_v62 }
  0xd4   : > { %v925_v7 = vadd.f32 %v924_v60, %v836_v6  ;;  %874 = vmatmul.bf16.gmra.mxu1 %v1375_v2  ;;  %1535 = vmatmul.msk.bf16.gmra.mxu3 %vm674_vm1, %v1439_v3 }
  0xd6   : > { %v998_v10 = vmax.f32 %v925_v7, 0.0 }
  0xd7   : > { %v926_v11 = vpop.f32.mrf.mxu2  ;;  %v1902_v12 = vpop.f32.mrf.mxu3 }
  0xd8   : > { %1030 = vst [vmem:[%s1682_s22 + $0x20] sm:$0xff] %v998_v10  ;;  %v1062_v15 = vadd.f32 %v1061_v63, %v998_v10  ;;  %v1103_v16 = vmul.f32 %v998_v10, %v998_v10  ;;  %v748_v17 = vpop.f32.mrf.mxu0 }
  0xd9   : > { %v837_v18 = vpop.f32.mrf.mxu1 }
  0xda   : > { %v1134_v19 = vadd.f32 %v1133_v5, %v1103_v16  ;;  %v838_v20 = vadd.f32 %v837_v18, %v748_v17 }
  0xdc   : > { %1531 = vmatmul.msk.bf16.gmra.mxu2 %vm674_vm1, %v1391_v13  ;;  %v927_v21 = vadd.f32 %v926_v11, %v838_v20 }
  0xde   : > { %v999_v26 = vmax.f32 %v927_v21, 0.0 }
  0xdf   : > { %v929_v27 = vpop.f32.mrf.mxu2  ;;  %v1910_v29 = vpop.f32.mrf.mxu3 }
  0xe0   : > { %1031 = vst [vmem:[%s1682_s22 + $0x28] sm:$0xff] %v999_v26  ;;  %v1063_v31 = vadd.f32 %v1062_v15, %v999_v26  ;;  %v1104_v32 = vmul.f32 %v999_v26, %v999_v26  ;;  %v751_v33 = vpop.f32.mrf.mxu0 }
  0xe1   : > { %v840_v35 = vpop.f32.mrf.mxu1 }
  0xe2   : > { %v1135_v36 = vadd.f32 %v1134_v19, %v1104_v32  ;;  %v841_v37 = vadd.f32 %v840_v35, %v751_v33 }
  0xe3   : > { %790 = vmatmul.bf16.gmra.mxu0 %v1383_v30 }
  0xe4   : > { %v930_v38 = vadd.f32 %v929_v27, %v841_v37  ;;  %879 = vmatmul.bf16.gmra.mxu1 %v1387_v34 }
  0xe6   : > { %v1000_v41 = vmax.f32 %v930_v38, 0.0 }
  0xe7   : > { %v931_v42 = vpop.f32.mrf.mxu2  ;;  %v1915_v43 = vpop.f32.mrf.mxu3 }
  0xe8   : > { %1032 = vst [vmem:[%s1682_s22 + $0x30] sm:$0xff] %v1000_v41  ;;  %v1064_v46 = vadd.f32 %v1063_v31, %v1000_v41  ;;  %v1105_v47 = vmul.f32 %v1000_v41, %v1000_v41  ;;  %v753_v48 = vpop.f32.mrf.mxu0 }
  0xe9   : > { %v842_v49 = vpop.f32.mrf.mxu1 }
  0xea   : > { %v1136_v50 = vadd.f32 %v1135_v36, %v1105_v47  ;;  %v843_v51 = vadd.f32 %v842_v49, %v753_v48 }
  0xec   : > { %1532 = vmatmul.msk.bf16.gmra.mxu2 %vm674_vm1, %v1403_v45  ;;  %v932_v52 = vadd.f32 %v931_v42, %v843_v51 }
  0xee   : > { %v1001_v53 = vmax.f32 %v932_v52, 0.0 }
  0xef   : > { %v934_v54 = vpop.f32.mrf.mxu2  ;;  %v1919_v55 = vpop.f32.mrf.mxu3 }
  0xf0   : > { %1033 = vst [vmem:[%s1682_s22 + $0x38] sm:$0xff] %v1001_v53  ;;  %v1065_v56 = vadd.f32 %v1064_v46, %v1001_v53  ;;  %v1106_v57 = vmul.f32 %v1001_v53, %v1001_v53  ;;  %v756_v58 = vpop.f32.mrf.mxu0 }
  0xf1   : > { %v845_v59 = vpop.f32.mrf.mxu1 }
  0xf2   : > { %v1137_v60 = vadd.f32 %v1136_v50, %v1106_v57  ;;  %v846_v62 = vadd.f32 %v845_v59, %v756_v58 }
  0xf4   : > { %v935_v63 = vadd.f32 %v934_v54, %v846_v62 }
  0xf6   : > { %v1002_v0 = vmax.f32 %v935_v63, 0.0 }
  0xf7   : > { %v936_v1 = vpop.f32.mrf.mxu2  ;;  %v885_v2 = vpop.f32.mrf.mxu3 }
  0xf8   : > { %1034 = vst [vmem:[%s1682_s22 + $0x40] sm:$0xff] %v1002_v0  ;;  %v1066_v3 = vadd.f32 %v1065_v56, %v1002_v0  ;;  %v1107_v4 = vmul.f32 %v1002_v0, %v1002_v0  ;;  %v1924_v5 = vadd.f32 %v885_v2, %v1870_v14  ;;  %v758_v6 = vpop.f32.mrf.mxu0 }
  0xf9   : > { %v847_v7 = vpop.f32.mrf.mxu1 }
  0xfa   : > { %v1138_v8 = vadd.f32 %v1137_v60, %v1107_v4  ;;  %v848_v9 = vadd.f32 %v847_v7, %v758_v6 }
  0xfc   : > { %v937_v10 = vadd.f32 %v936_v1, %v848_v9 }
  0xfe   : > { %v1003_v11 = vmax.f32 %v937_v10, 0.0 }
  0xff   : > { %v939_v13 = vpop.f32.mrf.mxu2  ;;  %v887_v15 = vpop.f32.mrf.mxu3 }
 0x100   : > { %1035 = vst [vmem:[%s1682_s22 + $0x48] sm:$0xff] %v1003_v11  ;;  %v1067_v16 = vadd.f32 %v1066_v3, %v1003_v11  ;;  %v1108_v17 = vmul.f32 %v1003_v11, %v1003_v11  ;;  %v1928_v18 = vadd.f32 %v887_v15, %v1880_v28  ;;  %v761_v19 = vpop.f32.mrf.mxu0 }
 0x101   : > { %v850_v20 = vpop.f32.mrf.mxu1 }
 0x102   : > { %v1139_v21 = vadd.f32 %v1138_v8, %v1108_v17  ;;  %v851_v14 = vadd.f32 %v850_v20, %v761_v19 }
 0x104   : > { %v940_v22 = vadd.f32 %v939_v13, %v851_v14 }
 0x106   : > { %v1004_v23 = vmax.f32 %v940_v22, 0.0 }
 0x107   : > { %v941_v24 = vpop.f32.mrf.mxu2  ;;  %v890_v25 = vpop.f32.mrf.mxu3 }
 0x108   : > { %1036 = vst [vmem:[%s1682_s22 + $0x50] sm:$0xff] %v1004_v23  ;;  %v1068_v26 = vadd.f32 %v1067_v16, %v1004_v23  ;;  %v1109_v27 = vmul.f32 %v1004_v23, %v1004_v23  ;;  %v763_v30 = vpop.f32.mrf.mxu0  ;;  %v891_v14 = vadd.f32 %v890_v25, %v1886_v44 }
 0x109   : > { %v852_v31 = vpop.f32.mrf.mxu1 }
 0x10a   : > { %v1140_v32 = vadd.f32 %v1139_v21, %v1109_v27  ;;  %v853_v33 = vadd.f32 %v852_v31, %v763_v30 }
 0x10c   : > { %v942_v34 = vadd.f32 %v941_v24, %v853_v33 }
 0x10e   : > { %v1005_v28 = vmax.f32 %v942_v34, 0.0 }
 0x10f   : > { %v944_v35 = vpop.f32.mrf.mxu2  ;;  %v892_v36 = vpop.f32.mrf.mxu3 }
 0x110   : > { %1037 = vst [vmem:[%s1682_s22 + $0x58] sm:$0xff] %v1005_v28  ;;  %v1069_v37 = vadd.f32 %v1068_v26, %v1005_v28  ;;  %v1110_v38 = vmul.f32 %v1005_v28, %v1005_v28  ;;  %v766_v39 = vpop.f32.mrf.mxu0  ;;  %v893_v34 = vadd.f32 %v892_v36, %v1896_v61 }
 0x111   : > { %v855_v40 = vpop.f32.mrf.mxu1 }
 0x112   : > { %v1141_v41 = vadd.f32 %v1140_v32, %v1110_v38  ;;  %v856_v42 = vadd.f32 %v855_v40, %v766_v39 }
 0x114   : > { %v945_v45 = vadd.f32 %v944_v35, %v856_v42 }
 0x116   : > { %v1006_v46 = vmax.f32 %v945_v45, 0.0 }
 0x117   : > { %v946_v47 = vpop.f32.mrf.mxu2  ;;  %v895_v48 = vpop.f32.mrf.mxu3 }
 0x118   : > { %1038 = vst [vmem:[%s1682_s22 + $0x60] sm:$0xff] %v1006_v46  ;;  %v1070_v49 = vadd.f32 %v1069_v37, %v1006_v46  ;;  %v1111_v50 = vmul.f32 %v1006_v46, %v1006_v46  ;;  %v768_v51 = vpop.f32.mrf.mxu0  ;;  %v896_v42 = vadd.f32 %v895_v48, %v1902_v12 }
 0x119   : > { %v857_v52 = vpop.f32.mrf.mxu1 }
 0x11a   : > { %v1142_v53 = vadd.f32 %v1141_v41, %v1111_v50  ;;  %v858_v54 = vadd.f32 %v857_v52, %v768_v51 }
 0x11c   : > { %v947_v56 = vadd.f32 %v946_v47, %v858_v54 }
 0x11e   : > { %v1007_v57 = vmax.f32 %v947_v56, 0.0 }
 0x11f   : > { %v949_v58 = vpop.f32.mrf.mxu2  ;;  %v897_v59 = vpop.f32.mrf.mxu3 }
 0x120   : > { %1039 = vst [vmem:[%s1682_s22 + $0x68] sm:$0xff] %v1007_v57  ;;  %v1934_v60 = vadd.f32 %v1070_v49, %v1007_v57  ;;  %v1112_v62 = vmul.f32 %v1007_v57, %v1007_v57  ;;  %v771_v63 = vpop.f32.mrf.mxu0 }
 0x121   : > { %v860_v0 = vpop.f32.mrf.mxu1 }
 0x122   : > { %v1936_v1 = vadd.f32 %v1142_v53, %v1112_v62  ;;  %v861_v2 = vadd.f32 %v860_v0, %v771_v63  ;;  %v898_v53 = vadd.f32 %v897_v59, %v1910_v29 }
 0x124   : > { %v950_v3 = vadd.f32 %v949_v58, %v861_v2 }
 0x126   : > { %v1938_v4 = vmax.f32 %v950_v3, 0.0 }
 0x127   : > { %v951_v6 = vpop.f32.mrf.mxu2  ;;  %v900_v7 = vpop.f32.mrf.mxu3 }
 0x128   : > { %1040 = vst [vmem:[%s1682_s22 + $0x70] sm:$0xff] %v1938_v4  ;;  %v773_v8 = vpop.f32.mrf.mxu0  ;;  %v901_v2 = vadd.f32 %v900_v7, %v1915_v43 }
 0x129   : > { %v862_v9 = vpop.f32.mrf.mxu1 }
 0x12a   : > { %v863_v10 = vadd.f32 %v862_v9, %v773_v8 }
 0x12c   : > { %v952_v11 = vadd.f32 %v951_v6, %v863_v10 }
 0x12e   : > { %v1942_v13 = vmax.f32 %v952_v11, 0.0 }
 0x12f   : > { %v954_v15 = vpop.f32.mrf.mxu2  ;;  %v1944_v16 = vpop.f32.mrf.mxu3 }
 0x130   : > { %1041 = vst [vmem:[%s1682_s22 + $0x78] sm:$0xff] %v1942_v13  ;;  %v776_v17 = vpop.f32.mrf.mxu0  ;;  %v903_v43 = vadd.f32 %v1944_v16, %v1919_v55 }
 0x131   : > { %v865_v19 = vpop.f32.mrf.mxu1 }
 0x132   : > { %v866_v20 = vadd.f32 %v865_v19, %v776_v17  ;;  %v1113_v17 = vmul.f32 %v1938_v4, %v1938_v4 }
 0x134   : > { %v955_v21 = vadd.f32 %v954_v15, %v866_v20  ;;  %v1072_v20 = vadd.f32 %v1934_v60, %v1938_v4 }
 0x136   : > { %v1949_v22 = vmax.f32 %v955_v21, 0.0  ;;  %v1114_v21 = vmul.f32 %v1942_v13, %v1942_v13 }
 0x137   : > { %v956_v23 = vpop.f32.mrf.mxu2  ;;  %v979_v24 = vpop.f32.mrf.mxu3 }
 0x138   : > { %1042 = vst [vmem:[%s1682_s22 + $0x80] sm:$0xff] %v1949_v22  ;;  %v980_v26 = vadd.f32 %v979_v24, %v891_v14  ;;  %v778_v27 = vpop.f32.mrf.mxu0  ;;  %v1115_v55 = vmul.f32 %v1949_v22, %v1949_v22 }
 0x139   : > { %v867_v30 = vpop.f32.mrf.mxu1 }
 0x13a   : > { %v1953_v31 = vmax.f32 %v980_v26, 0.0  ;;  %v868_v32 = vadd.f32 %v867_v30, %v778_v27  ;;  %v1144_v26 = vadd.f32 %v1936_v1, %v1113_v17  ;;  %v1073_v27 = vadd.f32 %v1072_v20, %v1942_v13 }
 0x13c   : > { %1052 = vst [vmem:[%s1682_s22 + $0xd0] sm:$0xff] %v1953_v31  ;;  %v957_v33 = vadd.f32 %v956_v23, %v868_v32  ;;  %v1145_v60 = vadd.f32 %v1144_v26, %v1114_v21  ;;  %v1074_v4 = vadd.f32 %v1073_v27, %v1949_v22 }
 0x13e   : > { %v1958_v44 = vmax.f32 %v957_v33, 0.0  ;;  %v1146_v1 = vadd.f32 %v1145_v60, %v1115_v55 }
 0x13f   : > { %v959_v25 = vpop.f32.mrf.mxu2  ;;  %v981_v28 = vpop.f32.mrf.mxu3 }
 0x140   : > { %1043 = vst [vmem:[%s1682_s22 + $0x88] sm:$0xff] %v1958_v44  ;;  %v982_v35 = vadd.f32 %v981_v28, %v893_v34  ;;  %v781_v37 = vpop.f32.mrf.mxu0  ;;  %v1116_v33 = vmul.f32 %v1958_v44, %v1958_v44  ;;  %v1075_v13 = vadd.f32 %v1074_v4, %v1958_v44 }
 0x141   : > { %v870_v38 = vpop.f32.mrf.mxu1 }
 0x142   : > { %v1962_v39 = vmax.f32 %v982_v35, 0.0  ;;  %v871_v40 = vadd.f32 %v870_v38, %v781_v37  ;;  %v1147_v37 = vadd.f32 %v1146_v1, %v1116_v33 }
 0x144   : > { %1053 = vst [vmem:[%s1682_s22 + $0xd8] sm:$0xff] %v1962_v39  ;;  %v960_v41 = vadd.f32 %v959_v25, %v871_v40 }
 0x146   : > { %v1012_v61 = vmax.f32 %v960_v41, 0.0 }
 0x147   : > { %v961_v36 = vpop.f32.mrf.mxu2  ;;  %v984_v45 = vpop.f32.mrf.mxu3 }
 0x148   : > { %1044 = vst [vmem:[%s1682_s22 + $0x90] sm:$0xff] %v1012_v61  ;;  %v985_v46 = vadd.f32 %v984_v45, %v896_v42  ;;  %v783_v47 = vpop.f32.mrf.mxu0  ;;  %v1117_v25 = vmul.f32 %v1012_v61, %v1012_v61  ;;  %v1076_v38 = vadd.f32 %v1075_v13, %v1012_v61 }
 0x149   : > { %v872_v49 = vpop.f32.mrf.mxu1 }
 0x14a   : > { %v1968_v50 = vmax.f32 %v985_v46, 0.0  ;;  %v873_v51 = vadd.f32 %v872_v49, %v783_v47  ;;  %v1148_v42 = vadd.f32 %v1147_v37, %v1117_v25 }
 0x14c   : > { %1054 = vst [vmem:[%s1682_s22 + $0xe0] sm:$0xff] %v1968_v50  ;;  %v962_v52 = vadd.f32 %v961_v36, %v873_v51 }
 0x14e   : > { %v1013_v54 = vmax.f32 %v962_v52, 0.0 }
 0x14f   : > { %v964_v12 = vpop.f32.mrf.mxu2  ;;  %v986_v48 = vpop.f32.mrf.mxu3 }
 0x150   : > { %1045 = vst [vmem:[%s1682_s22 + $0x98] sm:$0xff] %v1013_v54  ;;  %v987_v56 = vadd.f32 %v986_v48, %v898_v53  ;;  %v786_v57 = vpop.f32.mrf.mxu0  ;;  %v1118_v40 = vmul.f32 %v1013_v54, %v1013_v54  ;;  %v1077_v36 = vadd.f32 %v1076_v38, %v1013_v54 }
 0x151   : > { %v875_v58 = vpop.f32.mrf.mxu1 }
 0x152   : > { %v1974_v62 = vmax.f32 %v987_v56, 0.0  ;;  %v876_v63 = vadd.f32 %v875_v58, %v786_v57  ;;  %v1149_v47 = vadd.f32 %v1148_v42, %v1118_v40 }
 0x154   : > { %1055 = vst [vmem:[%s1682_s22 + $0xe8] sm:$0xff] %v1974_v62  ;;  %v965_v0 = vadd.f32 %v964_v12, %v876_v63 }
 0x156   : > { %v1014_v3 = vmax.f32 %v965_v0, 0.0 }
 0x157   : > { %v966_v6 = vpop.f32.mrf.mxu2  ;;  %v989_v29 = vpop.f32.mrf.mxu3 }
 0x158   : > { %1046 = vst [vmem:[%s1682_s22 + $0xa0] sm:$0xff] %v1014_v3  ;;  %v990_v59 = vadd.f32 %v989_v29, %v901_v2  ;;  %v788_v8 = vpop.f32.mrf.mxu0  ;;  %v1119_v22 = vmul.f32 %v1014_v3, %v1014_v3  ;;  %v1078_v49 = vadd.f32 %v1077_v36, %v1014_v3 }
 0x159   : > { %v877_v9 = vpop.f32.mrf.mxu1 }
 0x15a   : > { %v1980_v10 = vmax.f32 %v990_v59, 0.0  ;;  %v878_v11 = vadd.f32 %v877_v9, %v788_v8  ;;  %v1150_v44 = vadd.f32 %v1149_v47, %v1119_v22 }
 0x15c   : > { %1056 = vst [vmem:[%s1682_s22 + $0xf0] sm:$0xff] %v1980_v10  ;;  %v967_v15 = vadd.f32 %v966_v6, %v878_v11 }
 0x15e   : > { %v1015_v7 = vmax.f32 %v967_v15, 0.0 }
 0x15f   : > { %v969_v19 = vpop.f32.mrf.mxu2  ;;  %v991_v14 = vpop.f32.mrf.mxu3 }
 0x160   : > { %1047 = vst [vmem:[%s1682_s22 + $0xa8] sm:$0xff] %v1015_v7  ;;  %v992_v23 = vadd.f32 %v991_v14, %v903_v43  ;;  %v791_v24 = vpop.f32.mrf.mxu0  ;;  %v1120_v51 = vmul.f32 %v1015_v7, %v1015_v7  ;;  %v1079_v53 = vadd.f32 %v1078_v49, %v1015_v7  ;;  %v1127_v14 = vmul.f32 %v1968_v50, %v1968_v50 }
 0x161   : > { %v880_v16 = vpop.f32.mrf.mxu1 }
 0x162   : > { %v1997_v30 = vmax.f32 %v992_v23, 0.0  ;;  %v881_v32 = vadd.f32 %v880_v16, %v791_v24  ;;  %v1151_v61 = vadd.f32 %v1150_v44, %v1120_v51  ;;  %v1128_v24 = vmul.f32 %v1974_v62, %v1974_v62 }
 0x164   : > { %1057 = vst [vmem:[%s1682_s22 + $0xf8] sm:$0xff] %v1997_v30  ;;  %v970_v34 = vadd.f32 %v969_v19, %v881_v32  ;;  %v1126_v19 = vmul.f32 %v1962_v39, %v1962_v39 }
 0x166   : > { %v1016_v28 = vmax.f32 %v970_v34, 0.0 }
 0x167   : > { %v971_v35 = vpop.f32.mrf.mxu2 }
 0x168   : > { %1048 = vst [vmem:[%s1682_s22 + $0xb0] sm:$0xff] %v1016_v28  ;;  %v793_v41 = vpop.f32.mrf.mxu0  ;;  %v1121_v12 = vmul.f32 %v1016_v28, %v1016_v28  ;;  %v1080_v57 = vadd.f32 %v1079_v53, %v1016_v28 }
 0x169   : > { %v882_v45 = vpop.f32.mrf.mxu1 }
 0x16a   : > { %v883_v46 = vadd.f32 %v882_v45, %v793_v41  ;;  %v1152_v63 = vadd.f32 %v1151_v61, %v1121_v12 }
 0x16c   : > { %v972_v52 = vadd.f32 %v971_v35, %v883_v46 }
 0x16e   : > { %v1017_v48 = vmax.f32 %v972_v52, 0.0 }
 0x16f   : > { %v974_v56 = vpop.f32.mrf.mxu2 }
 0x170   : > { %v975_v58 = vadd.f32 %v974_v56, %v1924_v5  ;;  %1049 = vst [vmem:[%s1682_s22 + $0xb8] sm:$0xff] %v1017_v48  ;;  %v1122_v54 = vmul.f32 %v1017_v48, %v1017_v48  ;;  %v1081_v2 = vadd.f32 %v1080_v57, %v1017_v48  ;;  %v1125_v5 = vmul.f32 %v1953_v31, %v1953_v31 }
 0x172   : > { %v1018_v0 = vmax.f32 %v975_v58, 0.0  ;;  %v1153_v29 = vadd.f32 %v1152_v63, %v1122_v54 }
 0x174   : > { %1050 = vst [vmem:[%s1682_s22 + $0xc0] sm:$0xff] %v1018_v0  ;;  %v1082_v3 = vadd.f32 %v1081_v2, %v1018_v0  ;;  %v1123_v6 = vmul.f32 %v1018_v0, %v1018_v0 }
 0x176   : > { %v1154_v59 = vadd.f32 %v1153_v29, %v1123_v6 }
 0x177   : > { %v976_v8 = vpop.f32.mrf.mxu2 }
 0x178   : > { %v977_v9 = vadd.f32 %v976_v8, %v1928_v18 }
 0x17a   : > { %v1019_v11 = vmax.f32 %v977_v9, 0.0 }
 0x17c   : > { %1051 = vst [vmem:[%s1682_s22 + $0xc8] sm:$0xff] %v1019_v11  ;;  %v1083_v15 = vadd.f32 %v1082_v3, %v1019_v11  ;;  %v1124_v17 = vmul.f32 %v1019_v11, %v1019_v11 }
 0x17e   : > { %v1084_v43 = vadd.f32 %v1083_v15, %v1953_v31  ;;  %v1155_v7 = vadd.f32 %v1154_v59, %v1124_v17  ;;  %v1129_v31 = vmul.f32 %v1980_v10, %v1980_v10 }
 0x180   : > { %v1085_v20 = vadd.f32 %v1084_v43, %v1962_v39  ;;  %v1156_v21 = vadd.f32 %v1155_v7, %v1125_v5  ;;  %v1130_v39 = vmul.f32 %v1997_v30, %v1997_v30 }
 0x182   : > { %v1086_v18 = vadd.f32 %v1085_v20, %v1968_v50  ;;  %v1157_v23 = vadd.f32 %v1156_v21, %v1126_v19 }
 0x184   : > { %v1087_v26 = vadd.f32 %v1086_v18, %v1974_v62  ;;  %v1158_v27 = vadd.f32 %v1157_v23, %v1127_v14 }
 0x186   : > { %v1088_v55 = vadd.f32 %v1087_v26, %v1980_v10  ;;  %v1159_v16 = vadd.f32 %v1158_v27, %v1128_v24  ;;  %v1058_v10 = vld [vmem:[%s2047_s3] sm:$0x1] }
 0x188   : > { %v1089_v32 = vadd.f32 %v1088_v55, %v1997_v30  ;;  %v1160_v60 = vadd.f32 %v1159_v16, %v1129_v31  ;;  %v1098_v30 = vld [vmem:[%s2048_s4] sm:$0x1] }
 0x18a   : > { %v1090_v50 = vrot.slane %v1089_v32, 4  ;;  %v1161_v4 = vadd.f32 %v1160_v60, %v1130_v39 }
 0x18c   : > { %v1091_v33 = vadd.f32 %v1090_v50, %v1089_v32  ;;  %v1162_v34 = vrot.slane %v1161_v4, 4 }
 0x18e   : > { %v1092_v1 = vrot.slane %v1091_v33, 2  ;;  %v1163_v13 = vadd.f32 %v1162_v34, %v1161_v4 }
 0x190   : > { %v1093_v62 = vadd.f32 %v1092_v1, %v1091_v33  ;;  %v1164_v25 = vrot.slane %v1163_v13, 2 }
 0x192   : > { %v1094_v28 = vrot.slane %v1093_v62, 1  ;;  %v1165_v35 = vadd.f32 %v1164_v25, %v1163_v13 }
 0x194   : > { %v1095_v37 = vadd.f32 %v1094_v28, %v1093_v62  ;;  %v1166_v38 = vrot.slane %v1165_v35, 1 }
 0x196   : > { %v1096_v40 = vadd.f32 %v1095_v37, %v1058_v10  ;;  %v1167_v41 = vadd.f32 %v1166_v38, %v1165_v35 }
 0x198   : > { %1097 = vst [vmem:[%s2047_s3] sm:$0x1] %v1096_v40  ;;  %v1168_v42 = vadd.f32 %v1167_v41, %v1098_v30 }
 0x19a   : > { %1169 = vst [vmem:[%s2048_s4] sm:$0x1] %v1168_v42 }
 0x19b PF: > { %s15_s15 = sadd.s32 1, %s1643_s15  }
 0x19c   : > { %p12_p5 = scmp.ge.s32.totalorder %s15_s15, 7  }
 0x19e   :  { %14 = sbr.rel (!%p12_p5) target bundleno = 1 (0x1), region = 78 }

// kernel: s2_forward.4
= control target key start
LH: loop header
LB: loop body
LE: loop exit
PB: predicated region body
PF: predicated region fallthrough
CT: control target
= control target key end

     0   :  { %s415_s12 = smov 0   ;;  %s574_s0 = inlined_call_operand.vmem [shape: f32[1280,128], index: 0, kind: input, shape index: {}]   ;;  %s575_s1 = inlined_call_operand.vmem [shape: f32[1,128], index: 1, kind: input, shape index: {}]   ;;  %s576_s2 = inlined_call_operand.vmem [shape: f32[1,128], index: 2, kind: input, shape index: {}]   ;;  %s577_s3 = inlined_call_operand.vmem [shape: f32[1280,128], index: 3, kind: output, shape index: {}]  }
   0x1 LB: > { %s366_s13 = sadd.s32 4294967295, %s393_s12   ;;  %p370_p0 = scmp.ge.s32.totalorder %s393_s12, 1  ;;  %s393_s12 = sphi %s415_s12, %s13_s12  }
   0x2   : > { %p138_p1 = scmp.lt.s32.totalorder %s393_s12, 6 }
   0x4   : > { %p139_p2 = pnand %p370_p0, %p138_p1 }
   0x5   : > { %s371_s14 = sshll.u32 (!%p139_p2), %s366_s13, 5 }
   0x6   : > { %142 = sbr.rel (%p139_p2) target bundleno = 51 (0x33), region = 32  ;;  %p163_p3 = scmp.lt.s32.totalorder (!%p139_p2), %s371_s14, 159 }
   0xb   : > { %s579_s14 = smov (!%p163_p3, %s371_s14), 159  ;;  %v426_v0 = vld [vmem:[%s575_s1] ss:$0 sm:$0xff] }
   0xc   : > { %s372_s17 = sshll.u32 %s579_s14, 3  ;;  %v436_v1 = vld [vmem:[%s576_s2] ss:$0 sm:$0xff] }
   0xd   : > { %s431_s20 = scalar_lea.vmem %s574_s0, %s372_s17  ;;  %s450_s25 = scalar_lea.vmem %s577_s3, %s372_s17 }
   0xe   : > { %v174_v2 = vld [vmem:[%s431_s20] sm:$0xff]  ;;  %v175_v3 = vld [vmem:[%s431_s20 + $0x8] sm:$0xff]  ;;  %v176_v4 = vld [vmem:[%s431_s20 + $0x10] sm:$0xff] }
   0xf   : > { %v210_v5 = vmul.f32 %v426_v0, %v174_v2  ;;  %v211_v6 = vmul.f32 %v426_v0, %v175_v3  ;;  %v212_v7 = vmul.f32 %v426_v0, %v176_v4  ;;  %v177_v8 = vld [vmem:[%s431_s20 + $0x18] sm:$0xff]  ;;  %v178_v9 = vld [vmem:[%s431_s20 + $0x20] sm:$0xff]  ;;  %v179_v10 = vld [vmem:[%s431_s20 + $0x28] sm:$0xff] }
  0x10   : > { %v213_v11 = vmul.f32 %v426_v0, %v177_v8  ;;  %v214_v12 = vmul.f32 %v426_v0, %v178_v9  ;;  %v215_v13 = vmul.f32 %v426_v0, %v179_v10  ;;  %v180_v14 = vld [vmem:[%s431_s20 + $0x30] sm:$0xff]  ;;  %v181_v15 = vld [vmem:[%s431_s20 + $0x38] sm:$0xff]  ;;  %v182_v16 = vld [vmem:[%s431_s20 + $0x40] sm:$0xff] }
  0x11   : > { %v246_v17 = vadd.f32 %v436_v1, %v210_v5  ;;  %v247_v18 = vadd.f32 %v436_v1, %v211_v6  ;;  %v248_v19 = vadd.f32 %v436_v1, %v212_v7  ;;  %v216_v20 = vmul.f32 %v426_v0, %v180_v14  ;;  %v183_v21 = vld [vmem:[%s431_s20 + $0x48] sm:$0xff]  ;;  %v184_v24 = vld [vmem:[%s431_s20 + $0x50] sm:$0xff]  ;;  %v185_v27 = vld [vmem:[%s431_s20 + $0x58] sm:$0xff] }
  0x12   : > { %v249_v22 = vadd.f32 %v436_v1, %v213_v11  ;;  %v217_v23 = vmul.f32 %v426_v0, %v181_v15  ;;  %v250_v25 = vadd.f32 %v436_v1, %v214_v12  ;;  %v218_v26 = vmul.f32 %v426_v0, %v182_v16  ;;  %v186_v30 = vld [vmem:[%s431_s20 + $0x60] sm:$0xff]  ;;  %v187_v33 = vld [vmem:[%s431_s20 + $0x68] sm:$0xff]  ;;  %v188_v36 = vld [vmem:[%s431_s20 + $0x70] sm:$0xff] }
  0x13   : > { %278 = vst [vmem:[%s450_s25] sm:$0xff] %v246_v17  ;;  %v251_v28 = vadd.f32 %v436_v1, %v215_v13  ;;  %v219_v29 = vmul.f32 %v426_v0, %v183_v21  ;;  %v252_v31 = vadd.f32 %v436_v1, %v216_v20  ;;  %v220_v32 = vmul.f32 %v426_v0, %v184_v24  ;;  %v189_v39 = vld [vmem:[%s431_s20 + $0x78] sm:$0xff]  ;;  %v190_v42 = vld [vmem:[%s431_s20 + $0x80] sm:$0xff]  ;;  %v191_v45 = vld [vmem:[%s431_s20 + $0x88] sm:$0xff] }
  0x14   : > { %279 = vst [vmem:[%s450_s25 + $0x8] sm:$0xff] %v247_v18  ;;  %v253_v34 = vadd.f32 %v436_v1, %v217_v23  ;;  %v221_v35 = vmul.f32 %v426_v0, %v185_v27  ;;  %v254_v37 = vadd.f32 %v436_v1, %v218_v26  ;;  %v222_v38 = vmul.f32 %v426_v0, %v186_v30  ;;  %v192_v48 = vld [vmem:[%s431_s20 + $0x90] sm:$0xff]  ;;  %v193_v51 = vld [vmem:[%s431_s20 + $0x98] sm:$0xff]  ;;  %v194_v54 = vld [vmem:[%s431_s20 + $0xa0] sm:$0xff] }
  0x15   : > { %280 = vst [vmem:[%s450_s25 + $0x10] sm:$0xff] %v248_v19  ;;  %v255_v40 = vadd.f32 %v436_v1, %v219_v29  ;;  %v223_v41 = vmul.f32 %v426_v0, %v187_v33  ;;  %v256_v43 = vadd.f32 %v436_v1, %v220_v32  ;;  %v224_v44 = vmul.f32 %v426_v0, %v188_v36  ;;  %v195_v57 = vld [vmem:[%s431_s20 + $0xa8] sm:$0xff]  ;;  %v196_v60 = vld [vmem:[%s431_s20 + $0xb0] sm:$0xff]  ;;  %v197_v63 = vld [vmem:[%s431_s20 + $0xb8] sm:$0xff] }
  0x16   : > { %281 = vst [vmem:[%s450_s25 + $0x18] sm:$0xff] %v249_v22  ;;  %v257_v46 = vadd.f32 %v436_v1, %v221_v35  ;;  %v225_v47 = vmul.f32 %v426_v0, %v189_v39  ;;  %v258_v49 = vadd.f32 %v436_v1, %v222_v38  ;;  %v226_v50 = vmul.f32 %v426_v0, %v190_v42  ;;  %v198_v4 = vld [vmem:[%s431_s20 + $0xc0] sm:$0xff]  ;;  %v199_v7 = vld [vmem:[%s431_s20 + $0xc8] sm:$0xff]  ;;  %v200_v10 = vld [vmem:[%s431_s20 + $0xd0] sm:$0xff] }
  0x17   : > { %282 = vst [vmem:[%s450_s25 + $0x20] sm:$0xff] %v250_v25  ;;  %v259_v52 = vadd.f32 %v436_v1, %v223_v41  ;;  %v227_v53 = vmul.f32 %v426_v0, %v191_v45  ;;  %v260_v55 = vadd.f32 %v436_v1, %v224_v44  ;;  %v228_v56 = vmul.f32 %v426_v0, %v192_v48  ;;  %v201_v13 = vld [vmem:[%s431_s20 + $0xd8] sm:$0xff]  ;;  %v202_v16 = vld [vmem:[%s431_s20 + $0xe0] sm:$0xff]  ;;  %v203_v19 = vld [vmem:[%s431_s20 + $0xe8] sm:$0xff] }
  0x18   : > { %283 = vst [vmem:[%s450_s25 + $0x28] sm:$0xff] %v251_v28  ;;  %v261_v58 = vadd.f32 %v436_v1, %v225_v47  ;;  %v229_v59 = vmul.f32 %v426_v0, %v193_v51  ;;  %v262_v61 = vadd.f32 %v436_v1, %v226_v50  ;;  %v230_v62 = vmul.f32 %v426_v0, %v194_v54  ;;  %v204_v22 = vld [vmem:[%s431_s20 + $0xf0] sm:$0xff]  ;;  %v205_v25 = vld [vmem:[%s431_s20 + $0xf8] sm:$0xff] }
  0x19   : > { %284 = vst [vmem:[%s450_s25 + $0x30] sm:$0xff] %v252_v31  ;;  %v263_v2 = vadd.f32 %v436_v1, %v227_v53  ;;  %v231_v3 = vmul.f32 %v426_v0, %v195_v57  ;;  %v264_v5 = vadd.f32 %v436_v1, %v228_v56  ;;  %v232_v6 = vmul.f32 %v426_v0, %v196_v60 }
  0x1a   : > { %285 = vst [vmem:[%s450_s25 + $0x38] sm:$0xff] %v253_v34  ;;  %v265_v8 = vadd.f32 %v436_v1, %v229_v59  ;;  %v233_v9 = vmul.f32 %v426_v0, %v197_v63  ;;  %v266_v11 = vadd.f32 %v436_v1, %v230_v62  ;;  %v234_v12 = vmul.f32 %v426_v0, %v198_v4 }
  0x1b   : > { %286 = vst [vmem:[%s450_s25 + $0x40] sm:$0xff] %v254_v37  ;;  %v267_v14 = vadd.f32 %v436_v1, %v231_v3  ;;  %v235_v15 = vmul.f32 %v426_v0, %v199_v7  ;;  %v268_v17 = vadd.f32 %v436_v1, %v232_v6  ;;  %v236_v18 = vmul.f32 %v426_v0, %v200_v10 }
  0x1c   : > { %287 = vst [vmem:[%s450_s25 + $0x48] sm:$0xff] %v255_v40  ;;  %v269_v20 = vadd.f32 %v436_v1, %v233_v9  ;;  %v237_v21 = vmul.f32 %v426_v0, %v201_v13  ;;  %v270_v23 = vadd.f32 %v436_v1, %v234_v12  ;;  %v238_v24 = vmul.f32 %v426_v0, %v202_v16 }
  0x1d   : > { %288 = vst [vmem:[%s450_s25 + $0x50] sm:$0xff] %v256_v43  ;;  %v271_v26 = vadd.f32 %v436_v1, %v235_v15  ;;  %v239_v27 = vmul.f32 %v426_v0, %v203_v19  ;;  %v272_v28 = vadd.f32 %v436_v1, %v236_v18  ;;  %v240_v29 = vmul.f32 %v426_v0, %v204_v22 }
  0x1e   : > { %289 = vst [vmem:[%s450_s25 + $0x58] sm:$0xff] %v257_v46  ;;  %v273_v30 = vadd.f32 %v436_v1, %v237_v21  ;;  %v241_v31 = vmul.f32 %v426_v0, %v205_v25  ;;  %v274_v32 = vadd.f32 %v436_v1, %v238_v24 }
  0x1f   : > { %290 = vst [vmem:[%s450_s25 + $0x60] sm:$0xff] %v258_v49  ;;  %v275_v33 = vadd.f32 %v436_v1, %v239_v27  ;;  %v276_v34 = vadd.f32 %v436_v1, %v240_v29 }
  0x20   : > { %291 = vst [vmem:[%s450_s25 + $0x68] sm:$0xff] %v259_v52  ;;  %v277_v35 = vadd.f32 %v436_v1, %v241_v31 }
  0x21   : > { %292 = vst [vmem:[%s450_s25 + $0x70] sm:$0xff] %v260_v55 }
  0x22   : > { %293 = vst [vmem:[%s450_s25 + $0x78] sm:$0xff] %v261_v58 }
  0x23   : > { %294 = vst [vmem:[%s450_s25 + $0x80] sm:$0xff] %v262_v61 }
  0x24   : > { %295 = vst [vmem:[%s450_s25 + $0x88] sm:$0xff] %v263_v2 }
  0x25   : > { %296 = vst [vmem:[%s450_s25 + $0x90] sm:$0xff] %v264_v5 }
  0x26   : > { %297 = vst [vmem:[%s450_s25 + $0x98] sm:$0xff] %v265_v8 }
  0x27   : > { %298 = vst [vmem:[%s450_s25 + $0xa0] sm:$0xff] %v266_v11 }
  0x28   : > { %299 = vst [vmem:[%s450_s25 + $0xa8] sm:$0xff] %v267_v14 }
  0x29   : > { %300 = vst [vmem:[%s450_s25 + $0xb0] sm:$0xff] %v268_v17 }
  0x2a   : > { %301 = vst [vmem:[%s450_s25 + $0xb8] sm:$0xff] %v269_v20 }
  0x2b   : > { %302 = vst [vmem:[%s450_s25 + $0xc0] sm:$0xff] %v270_v23 }
  0x2c   : > { %303 = vst [vmem:[%s450_s25 + $0xc8] sm:$0xff] %v271_v26 }
  0x2d   : > { %304 = vst [vmem:[%s450_s25 + $0xd0] sm:$0xff] %v272_v28 }
  0x2e   : > { %305 = vst [vmem:[%s450_s25 + $0xd8] sm:$0xff] %v273_v30 }
  0x2f   : > { %306 = vst [vmem:[%s450_s25 + $0xe0] sm:$0xff] %v274_v32 }
  0x30   : > { %307 = vst [vmem:[%s450_s25 + $0xe8] sm:$0xff] %v275_v33 }
  0x31   : > { %308 = vst [vmem:[%s450_s25 + $0xf0] sm:$0xff] %v276_v34 }
  0x32   : > { %309 = vst [vmem:[%s450_s25 + $0xf8] sm:$0xff] %v277_v35 }
  0x33 PF: > { %s13_s12 = sadd.s32 1, %s393_s12  }
  0x34   : > { %p10_p4 = scmp.ge.s32.totalorder %s13_s12, 7  }
  0x36   :  { %12 = sbr.rel (!%p10_p4) target bundleno = 1 (0x1), region = 62 }

// kernel: s2_forward.5
= control target key start
LH: loop header
LB: loop body
LE: loop exit
PB: predicated region body
PF: predicated region fallthrough
CT: control target
= control target key end

     0   :  { %s367_s10 = smov 120   ;;  %s368_s23 = smov 112   ;;  %vm264_vm0 = vcmask 588800   ;;  %vm321_vm1 = vcmask 523264   ;;  %vm346_vm2 = vcmask 654336   ;;  %s641_s0 = inlined_call_operand.vmem [shape: f32[64,144], index: 0, kind: input, shape index: {}]   ;;  %s642_s1 = inlined_call_operand.vmem [shape: f32[64,80], index: 1, kind: output, shape index: {}]  }
   0x1   :  { %v388_v0 = vld [vmem:[%s641_s0 + $0x20] sm:$0xff]  ;;  %v406_v3 = vld [vmem:[%s641_s0 + $0x30] sm:$0xff]  ;;  %s369_s24 = smov 104   ;;  %s370_s25 = smov 96   ;;  %v216_v21 = vld [vmem:[%s641_s0 + $0x8] sm:$0xff] }
   0x2   :  { %v393_v1 = vld [vmem:[%s641_s0] sm:$0xff]  ;;  %28 = vrot.lane.b32.xlu1 %v388_v0, %s367_s10  ;;  %v411_v4 = vld [vmem:[%s641_s0 + $0x10] sm:$0xff]  ;;  %s371_s26 = smov 88   ;;  %s372_s27 = smov 80   ;;  %v217_v27 = vld [vmem:[%s641_s0 + $0x18] sm:$0xff] }
   0x3   :  { %24 = vrot.lane.b32.xlu0 %v393_v1, %s367_s10  ;;  %v400_v2 = vld [vmem:[%s641_s0 + $0x40] sm:$0xff]  ;;  %v416_v5 = vld [vmem:[%s641_s0 + $0x50] sm:$0xff]  ;;  %s373_s30 = smov 72   ;;  %v498_v28 = vld [vmem:[%s641_s0 + $0x28] sm:$0xff]  ;;  %s374_s16 = smov 64  }
   0x4   :  { %32 = vrot.lane.b32.xlu2 %v400_v2, %s367_s10  ;;  %v424_v6 = vld [vmem:[%s641_s0 + $0x70] sm:$0xff]  ;;  %v429_v7 = vld [vmem:[%s641_s0 + $0x60] sm:$0xff]  ;;  %v219_v37 = vld [vmem:[%s641_s0 + $0x38] sm:$0xff] }
   0x5   :  { %v220_v46 = vld [vmem:[%s641_s0 + $0x48] sm:$0xff]  ;;  %v221_v47 = vld [vmem:[%s641_s0 + $0x58] sm:$0xff] }
   0x6   :  { %v222_v55 = vld [vmem:[%s641_s0 + $0x68] sm:$0xff]  ;;  %v223_v62 = vld [vmem:[%s641_s0 + $0x78] sm:$0xff] }
   0xa   :  { %30 = vrot.lane.b32.xlu1 %v406_v3, %s367_s10 }
   0xb   :  { %26 = vrot.lane.b32.xlu0 %v411_v4, %s367_s10 }
   0xc   :  { %34 = vrot.lane.b32.xlu2 %v416_v5, %s367_s10 }
  0x12   :  { %38 = vrot.lane.b32.xlu1 %v424_v6, %s367_s10 }
  0x13   :  { %36 = vrot.lane.b32.xlu0 %v429_v7, %s367_s10 }
  0x14   :  { %56 = vrot.lane.b32.xlu2 %v393_v1, %s368_s23 }
  0x1a   :  { %60 = vrot.lane.b32.xlu1 %v388_v0, %s368_s23 }
  0x1b   :  { %58 = vrot.lane.b32.xlu0 %v411_v4, %s368_s23 }
  0x1c   :  { %62 = vrot.lane.b32.xlu2 %v406_v3, %s368_s23 }
  0x22   :  { %66 = vrot.lane.b32.xlu1 %v416_v5, %s368_s23 }
  0x23   :  { %64 = vrot.lane.b32.xlu0 %v400_v2, %s368_s23 }
  0x24   :  { %68 = vrot.lane.b32.xlu2 %v429_v7, %s368_s23 }
  0x2a   :  { %88 = vrot.lane.b32.xlu1 %v393_v1, %s369_s24 }
  0x2b   :  { %70 = vrot.lane.b32.xlu0 %v424_v6, %s368_s23 }
  0x2c   :  { %90 = vrot.lane.b32.xlu2 %v411_v4, %s369_s24 }
  0x32   :  { %94 = vrot.lane.b32.xlu1 %v406_v3, %s369_s24 }
  0x33   :  { %92 = vrot.lane.b32.xlu0 %v388_v0, %s369_s24 }
  0x34   :  { %96 = vrot.lane.b32.xlu2 %v400_v2, %s369_s24 }
  0x3a   :  { %100 = vrot.lane.b32.xlu1 %v429_v7, %s369_s24 }
  0x3b   :  { %98 = vrot.lane.b32.xlu0 %v416_v5, %s369_s24 }
  0x3c   :  { %102 = vrot.lane.b32.xlu2 %v424_v6, %s369_s24 }
  0x42   :  { %122 = vrot.lane.b32.xlu1 %v411_v4, %s370_s25 }
  0x43   :  { %120 = vrot.lane.b32.xlu0 %v393_v1, %s370_s25 }
  0x44   :  { %124 = vrot.lane.b32.xlu2 %v388_v0, %s370_s25 }
  0x4a   :  { %128 = vrot.lane.b32.xlu1 %v400_v2, %s370_s25 }
  0x4b   :  { %126 = vrot.lane.b32.xlu0 %v406_v3, %s370_s25 }
  0x4c   :  { %130 = vrot.lane.b32.xlu2 %v416_v5, %s370_s25 }
  0x52   :  { %134 = vrot.lane.b32.xlu1 %v424_v6, %s370_s25 }
  0x53   :  { %132 = vrot.lane.b32.xlu0 %v429_v7, %s370_s25 }
  0x54   :  { %152 = vrot.lane.b32.xlu2 %v393_v1, %s371_s26 }
  0x5a   :  { %156 = vrot.lane.b32.xlu1 %v388_v0, %s371_s26 }
  0x5b   :  { %154 = vrot.lane.b32.xlu0 %v411_v4, %s371_s26 }
  0x5c   :  { %158 = vrot.lane.b32.xlu2 %v406_v3, %s371_s26 }
  0x5e   :  { %v33_v8 = vpop.permute.xlu2 %32 }
  0x5f   :  { %v52_v38 = vmax.f32 %v400_v2, %v33_v8 }
  0x62   :  { %162 = vrot.lane.b32.xlu1 %v416_v5, %s371_s26 }
  0x63   :  { %160 = vrot.lane.b32.xlu0 %v400_v2, %s371_s26 }
  0x64   :  { %164 = vrot.lane.b32.xlu2 %v429_v7, %s371_s26 }
  0x66   :  { %v35_v9 = vpop.permute.xlu2 %34 }
  0x67   :  { %v53_v39 = vmax.f32 %v416_v5, %v35_v9 }
  0x6a   :  { %184 = vrot.lane.b32.xlu1 %v393_v1, %s372_s27 }
  0x6b   :  { %166 = vrot.lane.b32.xlu0 %v424_v6, %s371_s26 }
  0x6c   :  { %186 = vrot.lane.b32.xlu2 %v411_v4, %s372_s27 }
  0x6e   :  { %v57_v10 = vpop.permute.xlu2 %56 }
  0x72   :  { %190 = vrot.lane.b32.xlu1 %v406_v3, %s372_s27 }
  0x73   :  { %188 = vrot.lane.b32.xlu0 %v388_v0, %s372_s27 }
  0x74   :  { %192 = vrot.lane.b32.xlu2 %v400_v2, %s372_s27  ;;  %v29_v11 = vpop.permute.xlu1 %28 }
  0x75   :  { %v25_v12 = vpop.permute.xlu0 %24  ;;  %v50_v29 = vmax.f32 %v388_v0, %v29_v11 }
  0x76   :  { %v48_v13 = vmax.f32 %v393_v1, %v25_v12  ;;  %v63_v14 = vpop.permute.xlu2 %62 }
  0x78   :  { %v471_v15 = vmax.f32 %v48_v13, %v57_v10 }
  0x7a   :  { %196 = vrot.lane.b32.xlu1 %v429_v7, %s372_s27 }
  0x7b   :  { %194 = vrot.lane.b32.xlu0 %v416_v5, %s372_s27 }
  0x7c   :  { %198 = vrot.lane.b32.xlu2 %v424_v6, %s372_s27  ;;  %v31_v16 = vpop.permute.xlu1 %30 }
  0x7d   :  { %v27_v17 = vpop.permute.xlu0 %26  ;;  %v51_v18 = vmax.f32 %v406_v3, %v31_v16 }
  0x7e   :  { %v69_v19 = vpop.permute.xlu2 %68  ;;  %v49_v30 = vmax.f32 %v411_v4, %v27_v17 }
  0x7f   :  { %v477_v20 = vmax.f32 %v51_v18, %v63_v14 }
  0x82   :  { %234 = vrot.lane.b32.xlu1 %v216_v21, %s373_s30 }
  0x83   :  { %232 = vrot.lane.b32.xlu0 %v393_v1, %s373_s30 }
  0x84   :  { %236 = vrot.lane.b32.xlu2 %v411_v4, %s373_s30  ;;  %v39_v22 = vpop.permute.xlu1 %38 }
  0x85   :  { %v37_v23 = vpop.permute.xlu0 %36  ;;  %v55_v48 = vmax.f32 %v424_v6, %v39_v22 }
  0x86   :  { %v54_v24 = vmax.f32 %v429_v7, %v37_v23  ;;  %v488_v25 = vpop.permute.xlu2 %90 }
  0x88   :  { %v490_v26 = vmax.f32 %v54_v24, %v69_v19 }
  0x8a   :  { %240 = vrot.lane.b32.xlu1 %v388_v0, %s373_s30 }
  0x8b   :  { %238 = vrot.lane.b32.xlu0 %v217_v27, %s373_s30 }
  0x8c   :  { %242 = vrot.lane.b32.xlu2 %v498_v28, %s373_s30  ;;  %v61_v31 = vpop.permute.xlu1 %60 }
  0x8d   :  { %v59_v32 = vpop.permute.xlu0 %58  ;;  %v82_v33 = vmax.f32 %v50_v29, %v61_v31 }
  0x8e   :  { %v81_v34 = vmax.f32 %v49_v30, %v59_v32  ;;  %v97_v35 = vpop.permute.xlu2 %96 }
  0x90   :  { %v113_v36 = vmax.f32 %v81_v34, %v488_v25 }
  0x92   :  { %246 = vrot.lane.b32.xlu1 %v219_v37, %s373_s30 }
  0x93   :  { %244 = vrot.lane.b32.xlu0 %v406_v3, %s373_s30 }
  0x94   :  { %248 = vrot.lane.b32.xlu2 %v400_v2, %s373_s30  ;;  %v67_v40 = vpop.permute.xlu1 %66 }
  0x95   :  { %v65_v41 = vpop.permute.xlu0 %64  ;;  %v85_v42 = vmax.f32 %v53_v39, %v67_v40 }
  0x96   :  { %v84_v43 = vmax.f32 %v52_v38, %v65_v41  ;;  %v103_v44 = vpop.permute.xlu2 %102 }
  0x98   :  { %v116_v45 = vmax.f32 %v84_v43, %v97_v35 }
  0x9a   :  { %252 = vrot.lane.b32.xlu1 %v416_v5, %s373_s30 }
  0x9b   :  { %250 = vrot.lane.b32.xlu0 %v220_v46, %s373_s30 }
  0x9c   :  { %254 = vrot.lane.b32.xlu2 %v221_v47, %s373_s30  ;;  %v89_v49 = vpop.permute.xlu1 %88 }
  0x9d   :  { %v71_v50 = vpop.permute.xlu0 %70  ;;  %v112_v51 = vmax.f32 %v471_v15, %v89_v49 }
  0x9e   :  { %v87_v52 = vmax.f32 %v55_v48, %v71_v50  ;;  %v125_v53 = vpop.permute.xlu2 %124 }
  0xa0   :  { %v119_v54 = vmax.f32 %v87_v52, %v103_v44 }
  0xa2   :  { %258 = vrot.lane.b32.xlu1 %v222_v55, %s373_s30 }
  0xa3   :  { %256 = vrot.lane.b32.xlu0 %v429_v7, %s373_s30 }
  0xa4   :  { %260 = vrot.lane.b32.xlu2 %v424_v6, %s373_s30  ;;  %v95_v56 = vpop.permute.xlu1 %94 }
  0xa5   :  { %v93_v57 = vpop.permute.xlu0 %92  ;;  %v115_v58 = vmax.f32 %v477_v20, %v95_v56 }
  0xa6   :  { %v114_v59 = vmax.f32 %v82_v33, %v93_v57  ;;  %v131_v60 = vpop.permute.xlu2 %130 }
  0xa8   :  { %v539_v61 = vmax.f32 %v114_v59, %v125_v53 }
  0xaa   :  { %289 = vrot.lane.b32.xlu1 %v393_v1, %s374_s16 }
  0xab   :  { %262 = vrot.lane.b32.xlu0 %v223_v62, %s373_s30 }
  0xac   :  { %291 = vrot.lane.b32.xlu2 %v216_v21, %s374_s16  ;;  %v101_v63 = vpop.permute.xlu1 %100 }
  0xad   :  { %v99_v8 = vpop.permute.xlu0 %98  ;;  %v118_v9 = vmax.f32 %v490_v26, %v101_v63 }
  0xae   :  { %v117_v10 = vmax.f32 %v85_v42, %v99_v8  ;;  %v549_v11 = vpop.permute.xlu2 %152 }
  0xb0   :  { %v149_v12 = vmax.f32 %v117_v10, %v131_v60 }
  0xb2   :  { %295 = vrot.lane.b32.xlu1 %v217_v27, %s374_s16 }
  0xb3   :  { %293 = vrot.lane.b32.xlu0 %v411_v4, %s374_s16 }
  0xb4   :  { %297 = vrot.lane.b32.xlu2 %v388_v0, %s374_s16  ;;  %v123_v1 = vpop.permute.xlu1 %122 }
  0xb5   :  { %v121_v13 = vpop.permute.xlu0 %120  ;;  %v145_v14 = vmax.f32 %v113_v36, %v123_v1 }
  0xb6   :  { %v556_v15 = vmax.f32 %v112_v51, %v121_v13  ;;  %v159_v16 = vpop.permute.xlu2 %158 }
  0xb8   :  { %v176_v17 = vmax.f32 %v556_v15, %v549_v11 }
  0xba   :  { %301 = vrot.lane.b32.xlu1 %v406_v3, %s374_s16 }
  0xbb   :  { %299 = vrot.lane.b32.xlu0 %v498_v28, %s374_s16 }
  0xbc   :  { %303 = vrot.lane.b32.xlu2 %v219_v37, %s374_s16  ;;  %v129_v4 = vpop.permute.xlu1 %128 }
  0xbd   :  { %v127_v18 = vpop.permute.xlu0 %126  ;;  %v148_v0 = vmax.f32 %v116_v45, %v129_v4 }
  0xbe   :  { %v147_v19 = vmax.f32 %v115_v58, %v127_v18  ;;  %v165_v20 = vpop.permute.xlu2 %164 }
  0xc0   :  { %v179_v21 = vmax.f32 %v147_v19, %v159_v16 }
  0xc2   :  { %307 = vrot.lane.b32.xlu1 %v220_v46, %s374_s16 }
  0xc3   :  { %305 = vrot.lane.b32.xlu0 %v400_v2, %s374_s16 }
  0xc4   :  { %309 = vrot.lane.b32.xlu2 %v416_v5, %s374_s16  ;;  %v135_v3 = vpop.permute.xlu1 %134 }
  0xc5   :  { %v133_v22 = vpop.permute.xlu0 %132  ;;  %v151_v23 = vmax.f32 %v119_v54, %v135_v3 }
  0xc6   :  { %v150_v24 = vmax.f32 %v118_v9, %v133_v22  ;;  %v187_v25 = vpop.permute.xlu2 %186 }
  0xc8   :  { %v182_v26 = vmax.f32 %v150_v24, %v165_v20 }
  0xca   :  { %313 = vrot.lane.b32.xlu1 %v429_v7, %s374_s16 }
  0xcb   :  { %311 = vrot.lane.b32.xlu0 %v221_v47, %s374_s16 }
  0xcc   :  { %315 = vrot.lane.b32.xlu2 %v222_v55, %s374_s16  ;;  %v157_v27 = vpop.permute.xlu1 %156 }
  0xcd   :  { %v155_v28 = vpop.permute.xlu0 %154  ;;  %v178_v2 = vmax.f32 %v539_v61, %v157_v27 }
  0xce   :  { %v177_v29 = vmax.f32 %v145_v14, %v155_v28  ;;  %v193_v30 = vpop.permute.xlu2 %192 }
  0xd0   :  { %v209_v5 = vmax.f32 %v177_v29, %v187_v25 }
  0xd2   :  { %319 = vrot.lane.b32.xlu1 %v223_v62, %s374_s16 }
  0xd3   :  { %317 = vrot.lane.b32.xlu0 %v424_v6, %s374_s16 }
  0xd4   :  { %v163_v31 = vpop.permute.xlu1 %162 }
  0xd5   :  { %v161_v32 = vpop.permute.xlu0 %160  ;;  %v181_v33 = vmax.f32 %v149_v12, %v163_v31 }
  0xd6   :  { %v180_v7 = vmax.f32 %v148_v0, %v161_v32  ;;  %v199_v35 = vpop.permute.xlu2 %198 }
  0xd8   :  { %v578_v34 = vmax.f32 %v180_v7, %v193_v30 }
  0xdc   :  { %v185_v36 = vpop.permute.xlu1 %184 }
  0xdd   :  { %v167_v37 = vpop.permute.xlu0 %166  ;;  %v208_v8 = vmax.f32 %v176_v17, %v185_v36 }
  0xde   :  { %v183_v38 = vmax.f32 %v151_v23, %v167_v37  ;;  %v237_v40 = vpop.permute.xlu2 %236 }
  0xe0   :  { %v580_v39 = vmax.f32 %v183_v38, %v199_v35 }
  0xe4   :  { %v191_v41 = vpop.permute.xlu1 %190 }
  0xe5   :  { %v189_v42 = vpop.permute.xlu0 %188  ;;  %v211_v43 = vmax.f32 %v179_v21, %v191_v41 }
  0xe6   :  { %v210_v44 = vmax.f32 %v178_v2, %v189_v42  ;;  %v243_v45 = vpop.permute.xlu2 %242 }
  0xec   :  { %v197_v46 = vpop.permute.xlu1 %196 }
  0xed   :  { %v195_v6 = vpop.permute.xlu0 %194  ;;  %v582_v47 = vmax.f32 %v182_v26, %v197_v46 }
  0xee   :  { %v584_v48 = vmax.f32 %v181_v33, %v195_v6  ;;  %v249_v49 = vpop.permute.xlu2 %248 }
  0xf4   :  { %v235_v50 = vpop.permute.xlu1 %234 }
  0xf5   :  { %v233_v51 = vpop.permute.xlu0 %232 }
  0xf6   :  { %v255_v54 = vpop.permute.xlu2 %254  ;;  %v265_v63 = vsel %vm264_vm0, %v233_v51, %v235_v50 }
  0xf7   :  { %v281_v10 = vmax.f32 %v208_v8, %v265_v63 }
  0xfc   :  { %v241_v52 = vpop.permute.xlu1 %240 }
  0xfd   :  { %v239_v53 = vpop.permute.xlu0 %238  ;;  %v267_v19 = vsel %vm264_vm0, %v241_v52, %v243_v45 }
  0xfe   :  { %v261_v57 = vpop.permute.xlu2 %260  ;;  %v266_v16 = vsel %vm264_vm0, %v237_v40, %v239_v53  ;;  %v283_v21 = vmax.f32 %v210_v44, %v267_v19 }
  0xff   :  { %v282_v4 = vmax.f32 %v209_v5, %v266_v16 }
 0x104   :  { %v247_v55 = vpop.permute.xlu1 %246 }
 0x105   :  { %v245_v56 = vpop.permute.xlu0 %244 }
 0x106   :  { %v292_v60 = vpop.permute.xlu2 %291  ;;  %v268_v20 = vsel %vm264_vm0, %v245_v56, %v247_v55 }
 0x107   :  { %v284_v3 = vmax.f32 %v211_v43, %v268_v20 }
 0x10c   :  { %v253_v58 = vpop.permute.xlu1 %252 }
 0x10d   :  { %v251_v59 = vpop.permute.xlu0 %250  ;;  %v270_v33 = vsel %vm264_vm0, %v253_v58, %v255_v54 }
 0x10e   :  { %v298_v9 = vpop.permute.xlu2 %297  ;;  %v269_v2 = vsel %vm264_vm0, %v249_v49, %v251_v59  ;;  %v286_v36 = vmax.f32 %v584_v48, %v270_v33 }
 0x10f   :  { %v285_v29 = vmax.f32 %v578_v34, %v269_v2 }
 0x114   :  { %v259_v61 = vpop.permute.xlu1 %258 }
 0x115   :  { %v257_v62 = vpop.permute.xlu0 %256 }
 0x116   :  { %v304_v0 = vpop.permute.xlu2 %303  ;;  %v271_v7 = vsel %vm264_vm0, %v257_v62, %v259_v61 }
 0x117   :  { %v287_v37 = vmax.f32 %v582_v47, %v271_v7 }
 0x11c   :  { %v290_v12 = vpop.permute.xlu1 %289 }
 0x11d   :  { %v263_v1 = vpop.permute.xlu0 %262  ;;  %v322_v13 = vsel %vm321_vm1, %v290_v12, %v292_v60 }
 0x11e   :  { %v338_v14 = vmax.f32 %v281_v10, %v322_v13  ;;  %v310_v28 = vpop.permute.xlu2 %309  ;;  %v272_v44 = vsel %vm264_vm0, %v261_v57, %v263_v1 }
 0x11f   :  { %v288_v45 = vmax.f32 %v580_v39, %v272_v44 }
 0x120   :  { %347 = vst.msk [vmem:[%s642_s1] sm:$0xff] %vm346_vm2, %v338_v14 }
 0x124   :  { %v296_v18 = vpop.permute.xlu1 %295 }
 0x125   :  { %v294_v11 = vpop.permute.xlu0 %293 }
 0x126   :  { %v323_v15 = vsel %vm321_vm1, %v294_v11, %v296_v18  ;;  %v316_v35 = vpop.permute.xlu2 %315 }
 0x127   :  { %v339_v17 = vmax.f32 %v282_v4, %v323_v15 }
 0x129   :  { %348 = vst.msk [vmem:[%s642_s1 + $0x8] sm:$0xff] %vm346_vm2, %v339_v17 }
 0x12c   :  { %v302_v22 = vpop.permute.xlu1 %301 }
 0x12d   :  { %v300_v23 = vpop.permute.xlu0 %299  ;;  %v325_v24 = vsel %vm321_vm1, %v302_v22, %v304_v0 }
 0x12e   :  { %v324_v25 = vsel %vm321_vm1, %v298_v9, %v300_v23  ;;  %v341_v26 = vmax.f32 %v284_v3, %v325_v24 }
 0x12f   :  { %v340_v27 = vmax.f32 %v283_v21, %v324_v25 }
 0x130   :  { %350 = vst.msk [vmem:[%s642_s1 + $0x18] sm:$0xff] %vm346_vm2, %v341_v26 }
 0x131   :  { %349 = vst.msk [vmem:[%s642_s1 + $0x10] sm:$0xff] %vm346_vm2, %v340_v27 }
 0x134   :  { %v308_v30 = vpop.permute.xlu1 %307 }
 0x135   :  { %v306_v5 = vpop.permute.xlu0 %305 }
 0x136   :  { %v326_v31 = vsel %vm321_vm1, %v306_v5, %v308_v30 }
 0x137   :  { %v342_v32 = vmax.f32 %v285_v29, %v326_v31 }
 0x139   :  { %351 = vst.msk [vmem:[%s642_s1 + $0x20] sm:$0xff] %vm346_vm2, %v342_v32 }
 0x13c   :  { %v314_v34 = vpop.permute.xlu1 %313 }
 0x13d   :  { %v312_v38 = vpop.permute.xlu0 %311  ;;  %v328_v40 = vsel %vm321_vm1, %v314_v34, %v316_v35 }
 0x13e   :  { %v327_v41 = vsel %vm321_vm1, %v310_v28, %v312_v38  ;;  %v344_v42 = vmax.f32 %v287_v37, %v328_v40 }
 0x13f   :  { %v343_v43 = vmax.f32 %v286_v36, %v327_v41 }
 0x140   :  { %353 = vst.msk [vmem:[%s642_s1 + $0x30] sm:$0xff] %vm346_vm2, %v344_v42 }
 0x141   :  { %352 = vst.msk [vmem:[%s642_s1 + $0x28] sm:$0xff] %vm346_vm2, %v343_v43 }
 0x144   :  { %v320_v46 = vpop.permute.xlu1 %319 }
 0x145   :  { %v318_v6 = vpop.permute.xlu0 %317 }
 0x146   :  { %v329_v47 = vsel %vm321_vm1, %v318_v6, %v320_v46 }
 0x147   :  { %v345_v48 = vmax.f32 %v288_v45, %v329_v47 }
 0x149   :  { %354 = vst.msk [vmem:[%s642_s1 + $0x38] sm:$0xff] %vm346_vm2, %v345_v48 }

</bundles_post_ra>
